<compile_context>
chip_gen: v7x
topology: tpu7x:2x2x1
jax: 0.10.0
libtpu: 0.0.40
codegen_flags: <defaults>
</compile_context>

<pallas_src>
import functools

import jax
import jax.numpy as jnp
from jax.experimental import pallas as pl
from jax.experimental.pallas import tpu as pltpu


# ------------------------------- fused kernel -------------------------------- #

def _dcan_deconv_fused_kernel(xp_ref, wup_ref, bup_ref, wc_ref, bc_ref,
                              scale_ref, shift_ref, o_ref, *, s, aligned):
    """Fused ConvTranspose2d(k=s, s=s) + Conv3x3(pad=1) + bias + ReLU + BN over one row band.

    xp_ref : (1, Hp*Wpp, Cin)   zero-padded low-res input (full image), compute dtype
    wup_ref: aligned -> (Cin, s*s*Cmid) ; fallback -> (s*s, Cin, Cmid)   deconv weight
    bup_ref: (Hp, Wpp, Cmid)    f32 deconv bias plane, zero on the 1-pixel halo
    wc_ref : (9, Cmid, Cout)    conv weight, tap-major
    bc/scale/shift: (1, s*s*Cout) if aligned else (1, Cout)   f32 epilogue vectors
    o_ref  : aligned -> (1, BH, W, s*s*Cout) ; fallback -> (1, s*s, BH, W, Cout)
    """
    f32 = jnp.float32
    cdt = xp_ref.dtype                          # compute dtype (pre-cast in the wrapper)
    Wpp, Cmid = bup_ref.shape[1], bup_ref.shape[2]
    Cout = wc_ref.shape[2]
    if aligned:
        BH, W = o_ref.shape[1], o_ref.shape[2]
    else:
        BH, W = o_ref.shape[2], o_ref.shape[3]
    band = pl.program_id(1)
    Lp = (BH + 2) * Wpp

    # ---- stage 1: ConvTranspose2d(k=s, stride=s) over this band (+1-row halo each side) ----
    # Padded-input halo rows are zero and the bias plane is zero on the halo, so the phase
    # planes carry exactly the conv's padding=1 zeros on their 1-pixel border.
    row0 = band * BH                            # padded-plane row of this band's top halo
    start = pl.multiple_of(row0 * Wpp, 8)       # Wpp % 8 == 0 -> sublane-aligned dynamic slice
    xf = xp_ref[0, pl.ds(start, Lp), :]         # (Lp, Cin), already compute dtype
    bias_band = bup_ref[pl.ds(row0, BH + 2)].reshape(Lp, Cmid)   # (Lp, Cmid) f32, halo == 0

    planes = []
    if aligned:
        # ONE fused MXU matmul for all s*s deconv phases (K-major weight (Cin, s*s*Cmid)).
        y = jnp.dot(xf, wup_ref[...], preferred_element_type=f32)   # (Lp, s*s*Cmid)
        for p in range(s * s):
            yp = y[:, p * Cmid:(p + 1) * Cmid] + bias_band          # 128-aligned lane slice
            planes.append(yp.reshape(BH + 2, Wpp, Cmid).astype(cdt))
    else:
        for p in range(s * s):
            yp = jnp.dot(xf, wup_ref[p], preferred_element_type=f32) + bias_band
            planes.append(yp.reshape(BH + 2, Wpp, Cmid).astype(cdt))

    # ---- stage 2: 3x3 conv (padding=1) evaluated in phase (sub-pixel) space ---------------
    # Deduplicated shifted patches: only (s+2)^2 distinct (row, col) shifts exist (16 vs the
    # naive 9*s*s = 36 for s=2); each is built once per band and reused by every phase.
    shifted = {}
    for t in range(-1, s + 1):
        kr, dr = t % s, t // s                  # source phase row / low-res row shift
        for u in range(-1, s + 1):
            kc, dc = u % s, u // s
            patch = planes[kr * s + kc][1 + dr:1 + dr + BH, 1 + dc:1 + dc + W, :]
            shifted[(t, u)] = patch.reshape(BH * W, Cmid)

    taps = [(a, b) for a in range(3) for b in range(3)]
    if aligned:
        # Single K = 9*Cmid MXU reduction per phase; lane-dense output slab with one fused
        # bias + ReLU + BN epilogue for the whole band (phases folded into lanes).
        wcs = wc_ref[...].reshape(9 * Cmid, Cout)          # free collapse (Cmid % 128 == 0)
        outs = []
        for pi in range(s):
            for pj in range(s):
                stacked = jnp.concatenate(
                    [shifted[(pi + a - 1, pj + b - 1)] for (a, b) in taps], axis=1)
                outs.append(jnp.dot(stacked, wcs, preferred_element_type=f32))
        conv = jnp.concatenate(outs, axis=1)               # (BH*W, s*s*Cout) f32
        yact = jnp.maximum(conv + bc_ref[...], 0.0) * scale_ref[...] + shift_ref[...]
        o_ref[0] = yact.reshape(BH, W, s * s * Cout).astype(o_ref.dtype)
    else:
        # Tiny-channel fallback: per-tap dots accumulated (no zero-fill), hoisted weights and
        # epilogue vectors, phase-major stores (proven layout).
        wtaps = [wc_ref[i] for i in range(9)]              # hoisted (Cmid, Cout) tap weights
        bc = bc_ref[...]
        scale = scale_ref[...]
        shift = shift_ref[...]
        for pi in range(s):
            for pj in range(s):
                acc = None
                for i, (a, b) in enumerate(taps):
                    part = jnp.dot(shifted[(pi + a - 1, pj + b - 1)], wtaps[i],
                                   preferred_element_type=f32)
                    acc = part if acc is None else acc + part
                yact = jnp.maximum(acc + bc, 0.0) * scale + shift
                o_ref[0, pi * s + pj] = yact.reshape(BH, W, Cout).astype(o_ref.dtype)


# --------------------------------- wrapper ----------------------------------- #

def _auto_band_rows(H, W, Wpp, Cin, Cmid, Cout, s, cbytes, obytes,
                    budget_bytes=24 * 1024 * 1024):
    """Largest divisor of H whose per-band VMEM working set fits the budget."""
    def vmem_use(bh):
        lp = (bh + 2) * Wpp
        return (lp * Cin * cbytes                               # stage-1 input slice
                + lp * s * s * Cmid * 4                         # stage-1 f32 matmul output
                + s * s * lp * Cmid * cbytes                    # phase planes
                + (s + 2) ** 2 * bh * W * Cmid * cbytes         # deduped shifted patches
                + bh * W * 9 * Cmid * cbytes                    # one K-stacked patch
                + bh * W * s * s * Cout * 4                     # f32 conv acc / epilogue
                + 2 * bh * W * s * s * Cout * obytes)           # double-buffered out block
    for bh in range(H, 0, -1):
        if H % bh == 0 and vmem_use(bh) <= budget_bytes:
            return bh
    return 1


def dcan_deconv_forward(params, x_nchw, *, eps=1e-5, compute_dtype=jnp.bfloat16,
                        band_rows=None, out_dtype=None):
    wup, bup = params["up_w"], params["up_b"]
    wc, bc = params["conv_w"], params["conv_b"]
    s = wup.shape[0]
    N, Cin, H, W = x_nchw.shape
    Cmid, Cout = wup.shape[3], wc.shape[3]
    out_dtype = x_nchw.dtype if out_dtype is None else out_dtype
    # 128-aligned channels -> fused K-reduction + lane-dense output (production path).
    aligned = (Cmid % 128 == 0) and (Cout % 128 == 0)

    Hp = H + 2
    Wpp = ((W + 2 + 7) // 8) * 8                 # padded width, multiple of 8
    cbytes = jnp.dtype(compute_dtype).itemsize
    obytes = jnp.dtype(out_dtype).itemsize

    if band_rows is None:
        band_rows = _auto_band_rows(H, W, Wpp, Cin, Cmid, Cout, s, cbytes, obytes)
    if H % band_rows != 0:
        raise ValueError(f"band_rows={band_rows} must divide H={H}")
    num_bands = H // band_rows

    # NCHW -> NHWC, pre-cast to compute dtype (halves DMA for bf16), 1-pixel zero pad of the
    # low-res grid (this is the only HBM-side prep and touches only the small low-res input).
    x = jnp.transpose(x_nchw, (0, 2, 3, 1)).astype(compute_dtype)
    xp = jnp.pad(x, ((0, 0), (1, 1), (1, Wpp - W - 1), (0, 0)))
    xp_flat = xp.reshape(N, Hp * Wpp, Cin)

    # Deconv weight: fused K-major layout (Cin, s^2*Cmid) for the aligned path, phase-major
    # (s^2, Cin, Cmid) for the fallback path.  Conv weight: tap-major (9, Cmid, Cout).
    if aligned:
        wup_k = jnp.transpose(wup, (2, 0, 1, 3)).reshape(Cin, s * s * Cmid).astype(compute_dtype)
    else:
        wup_k = wup.reshape(s * s, Cin, Cmid).astype(compute_dtype)
    wc_k = wc.reshape(9, Cmid, Cout).astype(compute_dtype)

    # Deconv bias confined to the valid interior (halo of the phase planes must stay zero).
    bias_plane = jnp.pad(jnp.broadcast_to(bup.astype(jnp.float32), (H, W, Cmid)),
                         ((1, 1), (1, Wpp - W - 1), (0, 0)))

    # BatchNorm (inference) folded into scale/shift; epilogue vectors pre-tiled per phase on
    # the aligned (lane-dense) path so nothing is re-broadcast inside the kernel.
    inv_std = 1.0 / jnp.sqrt(params["bn_var"].astype(jnp.float32) + eps)
    scale = params["bn_gamma"].astype(jnp.float32) * inv_std
    shift = params["bn_beta"].astype(jnp.float32) - params["bn_mean"].astype(jnp.float32) * scale
    rep = s * s if aligned else 1
    bc_v = jnp.tile(bc.astype(jnp.float32), rep).reshape(1, rep * Cout)
    scale_v = jnp.tile(scale, rep).reshape(1, rep * Cout)
    shift_v = jnp.tile(shift, rep).reshape(1, rep * Cout)

    if aligned:
        out_shape = jax.ShapeDtypeStruct((N, H, W, s * s * Cout), out_dtype)
        out_spec = pl.BlockSpec((1, band_rows, W, s * s * Cout), lambda n, b: (n, b, 0, 0))
    else:
        out_shape = jax.ShapeDtypeStruct((N, s * s, H, W, Cout), out_dtype)
        out_spec = pl.BlockSpec((1, s * s, band_rows, W, Cout), lambda n, b: (n, 0, b, 0, 0))

    in_specs = [
        pl.BlockSpec((1, Hp * Wpp, Cin), lambda n, b: (n, 0, 0)),
        pl.BlockSpec(wup_k.shape, lambda n, b: (0,) * wup_k.ndim),
        pl.BlockSpec((Hp, Wpp, Cmid), lambda n, b: (0, 0, 0)),
        pl.BlockSpec((9, Cmid, Cout), lambda n, b: (0, 0, 0)),
        pl.BlockSpec((1, rep * Cout), lambda n, b: (0, 0)),
        pl.BlockSpec((1, rep * Cout), lambda n, b: (0, 0)),
        pl.BlockSpec((1, rep * Cout), lambda n, b: (0, 0)),
    ]

    # Raise the scoped VMEM limit (defaults are 16-32 MiB); stay within v7x's 64 MiB physical.
    try:
        vmem_cap = int(pltpu.get_tpu_info().vmem_capacity_bytes)
    except Exception:  # noqa: BLE001 - fall back to a safe cross-generation default
        vmem_cap = 64 * 1024 * 1024
    vmem_limit = max(32 * 1024 * 1024, min(vmem_cap * 3 // 4, 100 * 1024 * 1024))

    # Advisory cost estimate using the real element sizes.
    flops = (2 * N * num_bands * (band_rows + 2) * Wpp * Cin * s * s * Cmid
             + 2 * N * H * W * s * s * 9 * Cmid * Cout)
    bytes_accessed = int(xp_flat.size * cbytes + wup_k.size * cbytes + wc_k.size * cbytes
                         + bias_plane.size * 4 + 3 * rep * Cout * 4
                         + N * H * W * s * s * Cout * obytes)

    kernel = functools.partial(_dcan_deconv_fused_kernel, s=s, aligned=aligned)

    out = pl.pallas_call(
        kernel,
        out_shape=out_shape,
        grid=(N, num_bands),
        in_specs=in_specs,
        out_specs=out_spec,
        compiler_params=pltpu.CompilerParams(
            dimension_semantics=("parallel", "parallel"),
            vmem_limit_bytes=int(vmem_limit)),
        cost_estimate=pl.CostEstimate(flops=flops, transcendentals=0,
                                      bytes_accessed=bytes_accessed),
    )(xp_flat, wup_k, bias_plane, wc_k, bc_v, scale_v, shift_v)

    # Single boundary transpose back to NCHW (replaces the NHWC->NCHW transpose that would be
    # needed anyway).  Output pixel of phase (pi, pj) at low-res (i, j) is (s*i+pi, s*j+pj).
    if aligned:
        out = out.reshape(N, H, W, s, s, Cout)
        out = jnp.transpose(out, (0, 5, 1, 3, 2, 4)).reshape(N, Cout, s * H, s * W)
    else:
        out = out.reshape(N, s, s, H, W, Cout)
        out = jnp.transpose(out, (0, 5, 3, 1, 4, 2)).reshape(N, Cout, s * H, s * W)
    return out


# -------------------------------- parameters --------------------------------- #

def init_dcan_deconv_params(key, in_ch, out_ch, upscale_factor):
    # Layouts: up_w (s, s, Cin, Cout)   <- torch ConvTranspose2d.weight.permute(2, 3, 0, 1)
    #          conv_w (3, 3, Cin, Cout) <- torch Conv2d.weight.permute(2, 3, 1, 0)
    s = upscale_factor
    k = jax.random.split(key, 8)
    f32 = jnp.float32
    return {
        "up_w": 0.1 * jax.random.normal(k[0], (s, s, in_ch, out_ch), f32),
        "up_b": 0.1 * jax.random.normal(k[1], (out_ch,), f32),
        "conv_w": 0.1 * jax.random.normal(k[2], (3, 3, out_ch, out_ch), f32),
        "conv_b": 0.1 * jax.random.normal(k[3], (out_ch,), f32),
        "bn_gamma": 1.0 + 0.1 * jax.random.normal(k[4], (out_ch,), f32),
        "bn_beta": 0.1 * jax.random.normal(k[5], (out_ch,), f32),
        "bn_mean": 0.1 * jax.random.normal(k[6], (out_ch,), f32),
        "bn_var": 0.9 + 0.2 * jnp.abs(jax.random.normal(k[7], (out_ch,), f32)),
    }


# ------------------------- pure-JAX reference (checking) --------------------- #

def _reference_forward(params, x_nchw, eps=1e-5):
    wup, bup = params["up_w"], params["up_b"]
    wc, bc = params["conv_w"], params["conv_b"]
    s = wup.shape[0]
    N, Cin, H, W = x_nchw.shape
    Cmid, Cout = wup.shape[3], wc.shape[3]
    x = jnp.transpose(x_nchw, (0, 2, 3, 1))
    up = jnp.einsum("nhwc,ijcd->nhiwjd", x, wup, precision="highest") + bup
    up = up.reshape(N, s * H, s * W, Cmid)
    upp = jnp.pad(up, ((0, 0), (1, 1), (1, 1), (0, 0)))
    out = jnp.zeros((N, s * H, s * W, Cout), jnp.float32) + bc
    for a in range(3):
        for b in range(3):
            out = out + jnp.einsum("nhwc,cd->nhwd",
                                   upp[:, a:a + s * H, b:b + s * W, :], wc[a, b],
                                   precision="highest")
    out = jnp.maximum(out, 0.0)
    scale = params["bn_gamma"] / jnp.sqrt(params["bn_var"] + eps)
    shift = params["bn_beta"] - params["bn_mean"] * scale
    out = out * scale + shift
    return jnp.transpose(out, (0, 3, 1, 2))


# ----------------------------------- demo ------------------------------------ #

if __name__ == "__main__":
    # --- config 1: small channels (fallback conv path), s=2, banded grid, f32 + bf16 ----
    k_p, k_x = jax.random.split(jax.random.PRNGKey(0))
    in_ch, out_ch, upscale = 8, 4, 2
    N, H, W = 2, 16, 16                           # low-res input; output is (2H, 2W)

    params = init_dcan_deconv_params(k_p, in_ch, out_ch, upscale)
    x = jax.random.normal(k_x, (N, in_ch, H, W), jnp.float32)
    ref = _reference_forward(params, x)

    fwd_f32 = jax.jit(functools.partial(dcan_deconv_forward, params,
                                        compute_dtype=jnp.float32, band_rows=4))
    out = jax.block_until_ready(fwd_f32(x))
    assert out.shape == (N, out_ch, upscale * H, upscale * W), out.shape
    assert bool(jnp.all(jnp.isfinite(out)))
    err = float(jnp.max(jnp.abs(out - ref)))
    assert err < 2e-2, f"f32 path max abs err vs reference = {err}"

    fwd_bf16 = jax.jit(functools.partial(dcan_deconv_forward, params,
                                         compute_dtype=jnp.bfloat16, band_rows=4))
    out_bf = jax.block_until_ready(fwd_bf16(x))
    assert bool(jnp.all(jnp.isfinite(out_bf)))
    err_bf = float(jnp.max(jnp.abs(out_bf - ref)))
    assert err_bf < 8e-2, f"bf16 path max abs err vs reference = {err_bf}"

    # --- config 2: 128-aligned channels (fused MXU K-reduction + lane-dense output), s=3 -
    k_p2, k_x2 = jax.random.split(jax.random.PRNGKey(1))
    in_ch2, out_ch2, upscale2 = 16, 128, 3
    N2, H2, W2 = 1, 8, 8

    params2 = init_dcan_deconv_params(k_p2, in_ch2, out_ch2, upscale2)
    x2 = jax.random.normal(k_x2, (N2, in_ch2, H2, W2), jnp.float32)
    ref2 = _reference_forward(params2, x2)

    fwd2 = jax.jit(functools.partial(dcan_deconv_forward, params2,
                                     compute_dtype=jnp.float32, band_rows=4))
    out2 = jax.block_until_ready(fwd2(x2))
    assert out2.shape == (N2, out_ch2, upscale2 * H2, upscale2 * W2), out2.shape
    assert bool(jnp.all(jnp.isfinite(out2)))
    err2 = float(jnp.max(jnp.abs(out2 - ref2)))
    tol2 = 3e-2 * (1.0 + float(jnp.max(jnp.abs(ref2))))
    assert err2 < tol2, f"aligned path max abs err vs reference = {err2} (tol {tol2})"

    print("KERNEL_OK")
</pallas_src>

<mosaic_0001>
module attributes {stable_mosaic.version = 11 : i64} {
  func.func @_dcan_deconv_fused_kernel(%arg0: i32, %arg1: i32, %arg2: memref<1x432x8xf32, #tpu.memory_space<vmem>>, %arg3: memref<4x8x4xf32, #tpu.memory_space<vmem>>, %arg4: memref<18x24x4xf32, #tpu.memory_space<vmem>>, %arg5: memref<9x4x4xf32, #tpu.memory_space<vmem>>, %arg6: memref<1x4xf32, #tpu.memory_space<vmem>>, %arg7: memref<1x4xf32, #tpu.memory_space<vmem>>, %arg8: memref<1x4xf32, #tpu.memory_space<vmem>>, %arg9: memref<1x4x4x16x4xf32, #tpu.memory_space<vmem>>) attributes {dimension_semantics = [#tpu.dimension_semantics<parallel>, #tpu.dimension_semantics<parallel>], iteration_bounds = array<i64: 2, 4>, scalar_prefetch = 0 : i64, scratch_operands = 0 : i64, tpu.core_type = #tpu.core_type<tc>, window_params = [{transform_indices = @transform_0, window_bounds = array<i64: 1, 432, 8>}, {pipeline_mode = #tpu.pipeline_mode<synchronous>, transform_indices = @transform_1, window_bounds = array<i64: 4, 8, 4>}, {pipeline_mode = #tpu.pipeline_mode<synchronous>, transform_indices = @transform_2, window_bounds = array<i64: 18, 24, 4>}, {pipeline_mode = #tpu.pipeline_mode<synchronous>, transform_indices = @transform_3, window_bounds = array<i64: 9, 4, 4>}, {pipeline_mode = #tpu.pipeline_mode<synchronous>, transform_indices = @transform_4, window_bounds = array<i64: 1, 4>}, {pipeline_mode = #tpu.pipeline_mode<synchronous>, transform_indices = @transform_5, window_bounds = array<i64: 1, 4>}, {pipeline_mode = #tpu.pipeline_mode<synchronous>, transform_indices = @transform_6, window_bounds = array<i64: 1, 4>}, {transform_indices = @transform_7, window_bounds = array<i64: 1, 4, 4, 16, 4>}]} {
    %c4_i32 = arith.constant 4 : i32
    %0 = arith.muli %arg1, %c4_i32 : i32
    %c24_i32 = arith.constant 24 : i32
    %1 = arith.muli %0, %c24_i32 : i32
    %2 = tpu.assume_multiple %1, 8 : i32
    %c0 = arith.constant 0 : index
    %3 = arith.index_cast %2 : i32 to index
    %c0_0 = arith.constant 0 : index
    %4 = vector.load %arg2[%c0, %3, %c0_0] : memref<1x432x8xf32, #tpu.memory_space<vmem>>, vector<1x144x8xf32>
    %5 = vector.shape_cast %4 : vector<1x144x8xf32> to vector<144x8xf32>
    %6 = arith.index_cast %0 : i32 to index
    %c0_1 = arith.constant 0 : index
    %c0_2 = arith.constant 0 : index
    %7 = vector.load %arg4[%6, %c0_1, %c0_2] : memref<18x24x4xf32, #tpu.memory_space<vmem>>, vector<6x24x4xf32>
    %8 = vector.shape_cast %7 : vector<6x24x4xf32> to vector<144x4xf32>
    %c0_3 = arith.constant 0 : index
    %c0_4 = arith.constant 0 : index
    %c0_5 = arith.constant 0 : index
    %9 = vector.load %arg3[%c0_3, %c0_4, %c0_5] : memref<4x8x4xf32, #tpu.memory_space<vmem>>, vector<1x8x4xf32>
    %10 = vector.shape_cast %9 : vector<1x8x4xf32> to vector<8x4xf32>
    %cst = arith.constant dense<0.000000e+00> : vector<144x4xf32>
    %11 = tpu.matmul %5, %10, %cst {dimension_numbers = #tpu.dot_dimension_numbers<[1], [0], [0], [1], [0, 0, 1, 1], [], []>} : vector<144x8xf32>, vector<8x4xf32>, vector<144x4xf32> -> vector<144x4xf32>
    %12 = arith.addf %11, %8 : vector<144x4xf32>
    %13 = vector.shape_cast %12 : vector<144x4xf32> to vector<6x24x4xf32>
    %c1 = arith.constant 1 : index
    %c0_6 = arith.constant 0 : index
    %c0_7 = arith.constant 0 : index
    %14 = vector.load %arg3[%c1, %c0_6, %c0_7] : memref<4x8x4xf32, #tpu.memory_space<vmem>>, vector<1x8x4xf32>
    %15 = vector.shape_cast %14 : vector<1x8x4xf32> to vector<8x4xf32>
    %cst_8 = arith.constant dense<0.000000e+00> : vector<144x4xf32>
    %16 = tpu.matmul %5, %15, %cst_8 {dimension_numbers = #tpu.dot_dimension_numbers<[1], [0], [0], [1], [0, 0, 1, 1], [], []>} : vector<144x8xf32>, vector<8x4xf32>, vector<144x4xf32> -> vector<144x4xf32>
    %17 = arith.addf %16, %8 : vector<144x4xf32>
    %18 = vector.shape_cast %17 : vector<144x4xf32> to vector<6x24x4xf32>
    %c2 = arith.constant 2 : index
    %c0_9 = arith.constant 0 : index
    %c0_10 = arith.constant 0 : index
    %19 = vector.load %arg3[%c2, %c0_9, %c0_10] : memref<4x8x4xf32, #tpu.memory_space<vmem>>, vector<1x8x4xf32>
    %20 = vector.shape_cast %19 : vector<1x8x4xf32> to vector<8x4xf32>
    %cst_11 = arith.constant dense<0.000000e+00> : vector<144x4xf32>
    %21 = tpu.matmul %5, %20, %cst_11 {dimension_numbers = #tpu.dot_dimension_numbers<[1], [0], [0], [1], [0, 0, 1, 1], [], []>} : vector<144x8xf32>, vector<8x4xf32>, vector<144x4xf32> -> vector<144x4xf32>
    %22 = arith.addf %21, %8 : vector<144x4xf32>
    %23 = vector.shape_cast %22 : vector<144x4xf32> to vector<6x24x4xf32>
    %c3 = arith.constant 3 : index
    %c0_12 = arith.constant 0 : index
    %c0_13 = arith.constant 0 : index
    %24 = vector.load %arg3[%c3, %c0_12, %c0_13] : memref<4x8x4xf32, #tpu.memory_space<vmem>>, vector<1x8x4xf32>
    %25 = vector.shape_cast %24 : vector<1x8x4xf32> to vector<8x4xf32>
    %cst_14 = arith.constant dense<0.000000e+00> : vector<144x4xf32>
    %26 = tpu.matmul %5, %25, %cst_14 {dimension_numbers = #tpu.dot_dimension_numbers<[1], [0], [0], [1], [0, 0, 1, 1], [], []>} : vector<144x8xf32>, vector<8x4xf32>, vector<144x4xf32> -> vector<144x4xf32>
    %27 = arith.addf %26, %8 : vector<144x4xf32>
    %28 = vector.shape_cast %27 : vector<144x4xf32> to vector<6x24x4xf32>
    %29 = vector.extract_strided_slice %28 {offsets = [0, 0, 0], sizes = [4, 16, 4], strides = [1, 1, 1]} : vector<6x24x4xf32> to vector<4x16x4xf32>
    %30 = vector.shape_cast %29 : vector<4x16x4xf32> to vector<64x4xf32>
    %31 = vector.extract_strided_slice %23 {offsets = [0, 1, 0], sizes = [4, 16, 4], strides = [1, 1, 1]} : vector<6x24x4xf32> to vector<4x16x4xf32>
    %32 = vector.shape_cast %31 : vector<4x16x4xf32> to vector<64x4xf32>
    %33 = vector.extract_strided_slice %28 {offsets = [0, 1, 0], sizes = [4, 16, 4], strides = [1, 1, 1]} : vector<6x24x4xf32> to vector<4x16x4xf32>
    %34 = vector.shape_cast %33 : vector<4x16x4xf32> to vector<64x4xf32>
    %35 = vector.extract_strided_slice %23 {offsets = [0, 2, 0], sizes = [4, 16, 4], strides = [1, 1, 1]} : vector<6x24x4xf32> to vector<4x16x4xf32>
    %36 = vector.shape_cast %35 : vector<4x16x4xf32> to vector<64x4xf32>
    %37 = vector.extract_strided_slice %18 {offsets = [1, 0, 0], sizes = [4, 16, 4], strides = [1, 1, 1]} : vector<6x24x4xf32> to vector<4x16x4xf32>
    %38 = vector.shape_cast %37 : vector<4x16x4xf32> to vector<64x4xf32>
    %39 = vector.extract_strided_slice %13 {offsets = [1, 1, 0], sizes = [4, 16, 4], strides = [1, 1, 1]} : vector<6x24x4xf32> to vector<4x16x4xf32>
    %40 = vector.shape_cast %39 : vector<4x16x4xf32> to vector<64x4xf32>
    %41 = vector.extract_strided_slice %18 {offsets = [1, 1, 0], sizes = [4, 16, 4], strides = [1, 1, 1]} : vector<6x24x4xf32> to vector<4x16x4xf32>
    %42 = vector.shape_cast %41 : vector<4x16x4xf32> to vector<64x4xf32>
    %43 = vector.extract_strided_slice %13 {offsets = [1, 2, 0], sizes = [4, 16, 4], strides = [1, 1, 1]} : vector<6x24x4xf32> to vector<4x16x4xf32>
    %44 = vector.shape_cast %43 : vector<4x16x4xf32> to vector<64x4xf32>
    %45 = vector.extract_strided_slice %28 {offsets = [1, 0, 0], sizes = [4, 16, 4], strides = [1, 1, 1]} : vector<6x24x4xf32> to vector<4x16x4xf32>
    %46 = vector.shape_cast %45 : vector<4x16x4xf32> to vector<64x4xf32>
    %47 = vector.extract_strided_slice %23 {offsets = [1, 1, 0], sizes = [4, 16, 4], strides = [1, 1, 1]} : vector<6x24x4xf32> to vector<4x16x4xf32>
    %48 = vector.shape_cast %47 : vector<4x16x4xf32> to vector<64x4xf32>
    %49 = vector.extract_strided_slice %28 {offsets = [1, 1, 0], sizes = [4, 16, 4], strides = [1, 1, 1]} : vector<6x24x4xf32> to vector<4x16x4xf32>
    %50 = vector.shape_cast %49 : vector<4x16x4xf32> to vector<64x4xf32>
    %51 = vector.extract_strided_slice %23 {offsets = [1, 2, 0], sizes = [4, 16, 4], strides = [1, 1, 1]} : vector<6x24x4xf32> to vector<4x16x4xf32>
    %52 = vector.shape_cast %51 : vector<4x16x4xf32> to vector<64x4xf32>
    %53 = vector.extract_strided_slice %18 {offsets = [2, 0, 0], sizes = [4, 16, 4], strides = [1, 1, 1]} : vector<6x24x4xf32> to vector<4x16x4xf32>
    %54 = vector.shape_cast %53 : vector<4x16x4xf32> to vector<64x4xf32>
    %55 = vector.extract_strided_slice %13 {offsets = [2, 1, 0], sizes = [4, 16, 4], strides = [1, 1, 1]} : vector<6x24x4xf32> to vector<4x16x4xf32>
    %56 = vector.shape_cast %55 : vector<4x16x4xf32> to vector<64x4xf32>
    %57 = vector.extract_strided_slice %18 {offsets = [2, 1, 0], sizes = [4, 16, 4], strides = [1, 1, 1]} : vector<6x24x4xf32> to vector<4x16x4xf32>
    %58 = vector.shape_cast %57 : vector<4x16x4xf32> to vector<64x4xf32>
    %59 = vector.extract_strided_slice %13 {offsets = [2, 2, 0], sizes = [4, 16, 4], strides = [1, 1, 1]} : vector<6x24x4xf32> to vector<4x16x4xf32>
    %60 = vector.shape_cast %59 : vector<4x16x4xf32> to vector<64x4xf32>
    %c0_15 = arith.constant 0 : index
    %c0_16 = arith.constant 0 : index
    %c0_17 = arith.constant 0 : index
    %61 = vector.load %arg5[%c0_15, %c0_16, %c0_17] : memref<9x4x4xf32, #tpu.memory_space<vmem>>, vector<1x4x4xf32>
    %62 = vector.shape_cast %61 : vector<1x4x4xf32> to vector<4x4xf32>
    %c1_18 = arith.constant 1 : index
    %c0_19 = arith.constant 0 : index
    %c0_20 = arith.constant 0 : index
    %63 = vector.load %arg5[%c1_18, %c0_19, %c0_20] : memref<9x4x4xf32, #tpu.memory_space<vmem>>, vector<1x4x4xf32>
    %64 = vector.shape_cast %63 : vector<1x4x4xf32> to vector<4x4xf32>
    %c2_21 = arith.constant 2 : index
    %c0_22 = arith.constant 0 : index
    %c0_23 = arith.constant 0 : index
    %65 = vector.load %arg5[%c2_21, %c0_22, %c0_23] : memref<9x4x4xf32, #tpu.memory_space<vmem>>, vector<1x4x4xf32>
    %66 = vector.shape_cast %65 : vector<1x4x4xf32> to vector<4x4xf32>
    %c3_24 = arith.constant 3 : index
    %c0_25 = arith.constant 0 : index
    %c0_26 = arith.constant 0 : index
    %67 = vector.load %arg5[%c3_24, %c0_25, %c0_26] : memref<9x4x4xf32, #tpu.memory_space<vmem>>, vector<1x4x4xf32>
    %68 = vector.shape_cast %67 : vector<1x4x4xf32> to vector<4x4xf32>
    %c4 = arith.constant 4 : index
    %c0_27 = arith.constant 0 : index
    %c0_28 = arith.constant 0 : index
    %69 = vector.load %arg5[%c4, %c0_27, %c0_28] : memref<9x4x4xf32, #tpu.memory_space<vmem>>, vector<1x4x4xf32>
    %70 = vector.shape_cast %69 : vector<1x4x4xf32> to vector<4x4xf32>
    %c5 = arith.constant 5 : index
    %c0_29 = arith.constant 0 : index
    %c0_30 = arith.constant 0 : index
    %71 = vector.load %arg5[%c5, %c0_29, %c0_30] : memref<9x4x4xf32, #tpu.memory_space<vmem>>, vector<1x4x4xf32>
    %72 = vector.shape_cast %71 : vector<1x4x4xf32> to vector<4x4xf32>
    %c6 = arith.constant 6 : index
    %c0_31 = arith.constant 0 : index
    %c0_32 = arith.constant 0 : index
    %73 = vector.load %arg5[%c6, %c0_31, %c0_32] : memref<9x4x4xf32, #tpu.memory_space<vmem>>, vector<1x4x4xf32>
    %74 = vector.shape_cast %73 : vector<1x4x4xf32> to vector<4x4xf32>
    %c7 = arith.constant 7 : index
    %c0_33 = arith.constant 0 : index
    %c0_34 = arith.constant 0 : index
    %75 = vector.load %arg5[%c7, %c0_33, %c0_34] : memref<9x4x4xf32, #tpu.memory_space<vmem>>, vector<1x4x4xf32>
    %76 = vector.shape_cast %75 : vector<1x4x4xf32> to vector<4x4xf32>
    %c8 = arith.constant 8 : index
    %c0_35 = arith.constant 0 : index
    %c0_36 = arith.constant 0 : index
    %77 = vector.load %arg5[%c8, %c0_35, %c0_36] : memref<9x4x4xf32, #tpu.memory_space<vmem>>, vector<1x4x4xf32>
    %78 = vector.shape_cast %77 : vector<1x4x4xf32> to vector<4x4xf32>
    %c0_37 = arith.constant 0 : index
    %c0_38 = arith.constant 0 : index
    %79 = vector.load %arg6[%c0_37, %c0_38] : memref<1x4xf32, #tpu.memory_space<vmem>>, vector<1x4xf32>
    %c0_39 = arith.constant 0 : index
    %c0_40 = arith.constant 0 : index
    %80 = vector.load %arg7[%c0_39, %c0_40] : memref<1x4xf32, #tpu.memory_space<vmem>>, vector<1x4xf32>
    %c0_41 = arith.constant 0 : index
    %c0_42 = arith.constant 0 : index
    %81 = vector.load %arg8[%c0_41, %c0_42] : memref<1x4xf32, #tpu.memory_space<vmem>>, vector<1x4xf32>
    %cst_43 = arith.constant dense<0.000000e+00> : vector<64x4xf32>
    %82 = tpu.matmul %30, %62, %cst_43 {dimension_numbers = #tpu.dot_dimension_numbers<[1], [0], [0], [1], [0, 0, 1, 1], [], []>} : vector<64x4xf32>, vector<4x4xf32>, vector<64x4xf32> -> vector<64x4xf32>
    %cst_44 = arith.constant dense<0.000000e+00> : vector<64x4xf32>
    %83 = tpu.matmul %32, %64, %cst_44 {dimension_numbers = #tpu.dot_dimension_numbers<[1], [0], [0], [1], [0, 0, 1, 1], [], []>} : vector<64x4xf32>, vector<4x4xf32>, vector<64x4xf32> -> vector<64x4xf32>
    %84 = arith.addf %82, %83 : vector<64x4xf32>
    %cst_45 = arith.constant dense<0.000000e+00> : vector<64x4xf32>
    %85 = tpu.matmul %34, %66, %cst_45 {dimension_numbers = #tpu.dot_dimension_numbers<[1], [0], [0], [1], [0, 0, 1, 1], [], []>} : vector<64x4xf32>, vector<4x4xf32>, vector<64x4xf32> -> vector<64x4xf32>
    %86 = arith.addf %84, %85 : vector<64x4xf32>
    %cst_46 = arith.constant dense<0.000000e+00> : vector<64x4xf32>
    %87 = tpu.matmul %38, %68, %cst_46 {dimension_numbers = #tpu.dot_dimension_numbers<[1], [0], [0], [1], [0, 0, 1, 1], [], []>} : vector<64x4xf32>, vector<4x4xf32>, vector<64x4xf32> -> vector<64x4xf32>
    %88 = arith.addf %86, %87 : vector<64x4xf32>
    %cst_47 = arith.constant dense<0.000000e+00> : vector<64x4xf32>
    %89 = tpu.matmul %40, %70, %cst_47 {dimension_numbers = #tpu.dot_dimension_numbers<[1], [0], [0], [1], [0, 0, 1, 1], [], []>} : vector<64x4xf32>, vector<4x4xf32>, vector<64x4xf32> -> vector<64x4xf32>
    %90 = arith.addf %88, %89 : vector<64x4xf32>
    %cst_48 = arith.constant dense<0.000000e+00> : vector<64x4xf32>
    %91 = tpu.matmul %42, %72, %cst_48 {dimension_numbers = #tpu.dot_dimension_numbers<[1], [0], [0], [1], [0, 0, 1, 1], [], []>} : vector<64x4xf32>, vector<4x4xf32>, vector<64x4xf32> -> vector<64x4xf32>
    %92 = arith.addf %90, %91 : vector<64x4xf32>
    %cst_49 = arith.constant dense<0.000000e+00> : vector<64x4xf32>
    %93 = tpu.matmul %46, %74, %cst_49 {dimension_numbers = #tpu.dot_dimension_numbers<[1], [0], [0], [1], [0, 0, 1, 1], [], []>} : vector<64x4xf32>, vector<4x4xf32>, vector<64x4xf32> -> vector<64x4xf32>
    %94 = arith.addf %92, %93 : vector<64x4xf32>
    %cst_50 = arith.constant dense<0.000000e+00> : vector<64x4xf32>
    %95 = tpu.matmul %48, %76, %cst_50 {dimension_numbers = #tpu.dot_dimension_numbers<[1], [0], [0], [1], [0, 0, 1, 1], [], []>} : vector<64x4xf32>, vector<4x4xf32>, vector<64x4xf32> -> vector<64x4xf32>
    %96 = arith.addf %94, %95 : vector<64x4xf32>
    %cst_51 = arith.constant dense<0.000000e+00> : vector<64x4xf32>
    %97 = tpu.matmul %50, %78, %cst_51 {dimension_numbers = #tpu.dot_dimension_numbers<[1], [0], [0], [1], [0, 0, 1, 1], [], []>} : vector<64x4xf32>, vector<4x4xf32>, vector<64x4xf32> -> vector<64x4xf32>
    %98 = arith.addf %96, %97 : vector<64x4xf32>
    %99 = vector.broadcast %79 : vector<1x4xf32> to vector<64x4xf32>
    %100 = arith.addf %98, %99 : vector<64x4xf32>
    %cst_52 = arith.constant 0.000000e+00 : f32
    %101 = vector.broadcast %cst_52 : f32 to vector<64x4xf32>
    %102 = arith.maximumf %100, %101 : vector<64x4xf32>
    %103 = vector.broadcast %80 : vector<1x4xf32> to vector<64x4xf32>
    %104 = arith.mulf %102, %103 : vector<64x4xf32>
    %105 = vector.broadcast %81 : vector<1x4xf32> to vector<64x4xf32>
    %106 = arith.addf %104, %105 : vector<64x4xf32>
    %107 = vector.shape_cast %106 : vector<64x4xf32> to vector<4x16x4xf32>
    %c0_53 = arith.constant 0 : index
    %c0_54 = arith.constant 0 : index
    %c0_55 = arith.constant 0 : index
    %c0_56 = arith.constant 0 : index
    %c0_57 = arith.constant 0 : index
    %108 = vector.load %arg9[%c0_53, %c0_54, %c0_55, %c0_56, %c0_57] : memref<1x4x4x16x4xf32, #tpu.memory_space<vmem>>, vector<1x1x4x16x4xf32>
    %109 = vector.shape_cast %108 : vector<1x1x4x16x4xf32> to vector<4x16x4xf32>
    %110 = vector.shape_cast %107 : vector<4x16x4xf32> to vector<1x1x4x16x4xf32>
    tpu.vector_store %arg9[%c0_53, %c0_54, %c0_55, %c0_56, %c0_57], %110 {strides = array<i32>} : memref<1x4x4x16x4xf32, #tpu.memory_space<vmem>>, vector<1x1x4x16x4xf32>,
    %cst_58 = arith.constant dense<0.000000e+00> : vector<64x4xf32>
    %111 = tpu.matmul %32, %62, %cst_58 {dimension_numbers = #tpu.dot_dimension_numbers<[1], [0], [0], [1], [0, 0, 1, 1], [], []>} : vector<64x4xf32>, vector<4x4xf32>, vector<64x4xf32> -> vector<64x4xf32>
    %cst_59 = arith.constant dense<0.000000e+00> : vector<64x4xf32>
    %112 = tpu.matmul %34, %64, %cst_59 {dimension_numbers = #tpu.dot_dimension_numbers<[1], [0], [0], [1], [0, 0, 1, 1], [], []>} : vector<64x4xf32>, vector<4x4xf32>, vector<64x4xf32> -> vector<64x4xf32>
    %113 = arith.addf %111, %112 : vector<64x4xf32>
    %cst_60 = arith.constant dense<0.000000e+00> : vector<64x4xf32>
    %114 = tpu.matmul %36, %66, %cst_60 {dimension_numbers = #tpu.dot_dimension_numbers<[1], [0], [0], [1], [0, 0, 1, 1], [], []>} : vector<64x4xf32>, vector<4x4xf32>, vector<64x4xf32> -> vector<64x4xf32>
    %115 = arith.addf %113, %114 : vector<64x4xf32>
    %cst_61 = arith.constant dense<0.000000e+00> : vector<64x4xf32>
    %116 = tpu.matmul %40, %68, %cst_61 {dimension_numbers = #tpu.dot_dimension_numbers<[1], [0], [0], [1], [0, 0, 1, 1], [], []>} : vector<64x4xf32>, vector<4x4xf32>, vector<64x4xf32> -> vector<64x4xf32>
    %117 = arith.addf %115, %116 : vector<64x4xf32>
    %cst_62 = arith.constant dense<0.000000e+00> : vector<64x4xf32>
    %118 = tpu.matmul %42, %70, %cst_62 {dimension_numbers = #tpu.dot_dimension_numbers<[1], [0], [0], [1], [0, 0, 1, 1], [], []>} : vector<64x4xf32>, vector<4x4xf32>, vector<64x4xf32> -> vector<64x4xf32>
    %119 = arith.addf %117, %118 : vector<64x4xf32>
    %cst_63 = arith.constant dense<0.000000e+00> : vector<64x4xf32>
    %120 = tpu.matmul %44, %72, %cst_63 {dimension_numbers = #tpu.dot_dimension_numbers<[1], [0], [0], [1], [0, 0, 1, 1], [], []>} : vector<64x4xf32>, vector<4x4xf32>, vector<64x4xf32> -> vector<64x4xf32>
    %121 = arith.addf %119, %120 : vector<64x4xf32>
    %cst_64 = arith.constant dense<0.000000e+00> : vector<64x4xf32>
    %122 = tpu.matmul %48, %74, %cst_64 {dimension_numbers = #tpu.dot_dimension_numbers<[1], [0], [0], [1], [0, 0, 1, 1], [], []>} : vector<64x4xf32>, vector<4x4xf32>, vector<64x4xf32> -> vector<64x4xf32>
    %123 = arith.addf %121, %122 : vector<64x4xf32>
    %cst_65 = arith.constant dense<0.000000e+00> : vector<64x4xf32>
    %124 = tpu.matmul %50, %76, %cst_65 {dimension_numbers = #tpu.dot_dimension_numbers<[1], [0], [0], [1], [0, 0, 1, 1], [], []>} : vector<64x4xf32>, vector<4x4xf32>, vector<64x4xf32> -> vector<64x4xf32>
    %125 = arith.addf %123, %124 : vector<64x4xf32>
    %cst_66 = arith.constant dense<0.000000e+00> : vector<64x4xf32>
    %126 = tpu.matmul %52, %78, %cst_66 {dimension_numbers = #tpu.dot_dimension_numbers<[1], [0], [0], [1], [0, 0, 1, 1], [], []>} : vector<64x4xf32>, vector<4x4xf32>, vector<64x4xf32> -> vector<64x4xf32>
    %127 = arith.addf %125, %126 : vector<64x4xf32>
    %128 = vector.broadcast %79 : vector<1x4xf32> to vector<64x4xf32>
    %129 = arith.addf %127, %128 : vector<64x4xf32>
    %cst_67 = arith.constant 0.000000e+00 : f32
    %130 = vector.broadcast %cst_67 : f32 to vector<64x4xf32>
    %131 = arith.maximumf %129, %130 : vector<64x4xf32>
    %132 = vector.broadcast %80 : vector<1x4xf32> to vector<64x4xf32>
    %133 = arith.mulf %131, %132 : vector<64x4xf32>
    %134 = vector.broadcast %81 : vector<1x4xf32> to vector<64x4xf32>
    %135 = arith.addf %133, %134 : vector<64x4xf32>
    %136 = vector.shape_cast %135 : vector<64x4xf32> to vector<4x16x4xf32>
    %c0_68 = arith.constant 0 : index
    %c1_69 = arith.constant 1 : index
    %c0_70 = arith.constant 0 : index
    %c0_71 = arith.constant 0 : index
    %c0_72 = arith.constant 0 : index
    %137 = vector.load %arg9[%c0_68, %c1_69, %c0_70, %c0_71, %c0_72] : memref<1x4x4x16x4xf32, #tpu.memory_space<vmem>>, vector<1x1x4x16x4xf32>
    %138 = vector.shape_cast %137 : vector<1x1x4x16x4xf32> to vector<4x16x4xf32>
    %139 = vector.shape_cast %136 : vector<4x16x4xf32> to vector<1x1x4x16x4xf32>
    tpu.vector_store %arg9[%c0_68, %c1_69, %c0_70, %c0_71, %c0_72], %139 {strides = array<i32>} : memref<1x4x4x16x4xf32, #tpu.memory_space<vmem>>, vector<1x1x4x16x4xf32>,
    %cst_73 = arith.constant dense<0.000000e+00> : vector<64x4xf32>
    %140 = tpu.matmul %38, %62, %cst_73 {dimension_numbers = #tpu.dot_dimension_numbers<[1], [0], [0], [1], [0, 0, 1, 1], [], []>} : vector<64x4xf32>, vector<4x4xf32>, vector<64x4xf32> -> vector<64x4xf32>
    %cst_74 = arith.constant dense<0.000000e+00> : vector<64x4xf32>
    %141 = tpu.matmul %40, %64, %cst_74 {dimension_numbers = #tpu.dot_dimension_numbers<[1], [0], [0], [1], [0, 0, 1, 1], [], []>} : vector<64x4xf32>, vector<4x4xf32>, vector<64x4xf32> -> vector<64x4xf32>
    %142 = arith.addf %140, %141 : vector<64x4xf32>
    %cst_75 = arith.constant dense<0.000000e+00> : vector<64x4xf32>
    %143 = tpu.matmul %42, %66, %cst_75 {dimension_numbers = #tpu.dot_dimension_numbers<[1], [0], [0], [1], [0, 0, 1, 1], [], []>} : vector<64x4xf32>, vector<4x4xf32>, vector<64x4xf32> -> vector<64x4xf32>
    %144 = arith.addf %142, %143 : vector<64x4xf32>
    %cst_76 = arith.constant dense<0.000000e+00> : vector<64x4xf32>
    %145 = tpu.matmul %46, %68, %cst_76 {dimension_numbers = #tpu.dot_dimension_numbers<[1], [0], [0], [1], [0, 0, 1, 1], [], []>} : vector<64x4xf32>, vector<4x4xf32>, vector<64x4xf32> -> vector<64x4xf32>
    %146 = arith.addf %144, %145 : vector<64x4xf32>
    %cst_77 = arith.constant dense<0.000000e+00> : vector<64x4xf32>
    %147 = tpu.matmul %48, %70, %cst_77 {dimension_numbers = #tpu.dot_dimension_numbers<[1], [0], [0], [1], [0, 0, 1, 1], [], []>} : vector<64x4xf32>, vector<4x4xf32>, vector<64x4xf32> -> vector<64x4xf32>
    %148 = arith.addf %146, %147 : vector<64x4xf32>
    %cst_78 = arith.constant dense<0.000000e+00> : vector<64x4xf32>
    %149 = tpu.matmul %50, %72, %cst_78 {dimension_numbers = #tpu.dot_dimension_numbers<[1], [0], [0], [1], [0, 0, 1, 1], [], []>} : vector<64x4xf32>, vector<4x4xf32>, vector<64x4xf32> -> vector<64x4xf32>
    %150 = arith.addf %148, %149 : vector<64x4xf32>
    %cst_79 = arith.constant dense<0.000000e+00> : vector<64x4xf32>
    %151 = tpu.matmul %54, %74, %cst_79 {dimension_numbers = #tpu.dot_dimension_numbers<[1], [0], [0], [1], [0, 0, 1, 1], [], []>} : vector<64x4xf32>, vector<4x4xf32>, vector<64x4xf32> -> vector<64x4xf32>
    %152 = arith.addf %150, %151 : vector<64x4xf32>
    %cst_80 = arith.constant dense<0.000000e+00> : vector<64x4xf32>
    %153 = tpu.matmul %56, %76, %cst_80 {dimension_numbers = #tpu.dot_dimension_numbers<[1], [0], [0], [1], [0, 0, 1, 1], [], []>} : vector<64x4xf32>, vector<4x4xf32>, vector<64x4xf32> -> vector<64x4xf32>
    %154 = arith.addf %152, %153 : vector<64x4xf32>
    %cst_81 = arith.constant dense<0.000000e+00> : vector<64x4xf32>
    %155 = tpu.matmul %58, %78, %cst_81 {dimension_numbers = #tpu.dot_dimension_numbers<[1], [0], [0], [1], [0, 0, 1, 1], [], []>} : vector<64x4xf32>, vector<4x4xf32>, vector<64x4xf32> -> vector<64x4xf32>
    %156 = arith.addf %154, %155 : vector<64x4xf32>
    %157 = vector.broadcast %79 : vector<1x4xf32> to vector<64x4xf32>
    %158 = arith.addf %156, %157 : vector<64x4xf32>
    %cst_82 = arith.constant 0.000000e+00 : f32
    %159 = vector.broadcast %cst_82 : f32 to vector<64x4xf32>
    %160 = arith.maximumf %158, %159 : vector<64x4xf32>
    %161 = vector.broadcast %80 : vector<1x4xf32> to vector<64x4xf32>
    %162 = arith.mulf %160, %161 : vector<64x4xf32>
    %163 = vector.broadcast %81 : vector<1x4xf32> to vector<64x4xf32>
    %164 = arith.addf %162, %163 : vector<64x4xf32>
    %165 = vector.shape_cast %164 : vector<64x4xf32> to vector<4x16x4xf32>
    %c0_83 = arith.constant 0 : index
    %c2_84 = arith.constant 2 : index
    %c0_85 = arith.constant 0 : index
    %c0_86 = arith.constant 0 : index
    %c0_87 = arith.constant 0 : index
    %166 = vector.load %arg9[%c0_83, %c2_84, %c0_85, %c0_86, %c0_87] : memref<1x4x4x16x4xf32, #tpu.memory_space<vmem>>, vector<1x1x4x16x4xf32>
    %167 = vector.shape_cast %166 : vector<1x1x4x16x4xf32> to vector<4x16x4xf32>
    %168 = vector.shape_cast %165 : vector<4x16x4xf32> to vector<1x1x4x16x4xf32>
    tpu.vector_store %arg9[%c0_83, %c2_84, %c0_85, %c0_86, %c0_87], %168 {strides = array<i32>} : memref<1x4x4x16x4xf32, #tpu.memory_space<vmem>>, vector<1x1x4x16x4xf32>,
    %cst_88 = arith.constant dense<0.000000e+00> : vector<64x4xf32>
    %169 = tpu.matmul %40, %62, %cst_88 {dimension_numbers = #tpu.dot_dimension_numbers<[1], [0], [0], [1], [0, 0, 1, 1], [], []>} : vector<64x4xf32>, vector<4x4xf32>, vector<64x4xf32> -> vector<64x4xf32>
    %cst_89 = arith.constant dense<0.000000e+00> : vector<64x4xf32>
    %170 = tpu.matmul %42, %64, %cst_89 {dimension_numbers = #tpu.dot_dimension_numbers<[1], [0], [0], [1], [0, 0, 1, 1], [], []>} : vector<64x4xf32>, vector<4x4xf32>, vector<64x4xf32> -> vector<64x4xf32>
    %171 = arith.addf %169, %170 : vector<64x4xf32>
    %cst_90 = arith.constant dense<0.000000e+00> : vector<64x4xf32>
    %172 = tpu.matmul %44, %66, %cst_90 {dimension_numbers = #tpu.dot_dimension_numbers<[1], [0], [0], [1], [0, 0, 1, 1], [], []>} : vector<64x4xf32>, vector<4x4xf32>, vector<64x4xf32> -> vector<64x4xf32>
    %173 = arith.addf %171, %172 : vector<64x4xf32>
    %cst_91 = arith.constant dense<0.000000e+00> : vector<64x4xf32>
    %174 = tpu.matmul %48, %68, %cst_91 {dimension_numbers = #tpu.dot_dimension_numbers<[1], [0], [0], [1], [0, 0, 1, 1], [], []>} : vector<64x4xf32>, vector<4x4xf32>, vector<64x4xf32> -> vector<64x4xf32>
    %175 = arith.addf %173, %174 : vector<64x4xf32>
    %cst_92 = arith.constant dense<0.000000e+00> : vector<64x4xf32>
    %176 = tpu.matmul %50, %70, %cst_92 {dimension_numbers = #tpu.dot_dimension_numbers<[1], [0], [0], [1], [0, 0, 1, 1], [], []>} : vector<64x4xf32>, vector<4x4xf32>, vector<64x4xf32> -> vector<64x4xf32>
    %177 = arith.addf %175, %176 : vector<64x4xf32>
    %cst_93 = arith.constant dense<0.000000e+00> : vector<64x4xf32>
    %178 = tpu.matmul %52, %72, %cst_93 {dimension_numbers = #tpu.dot_dimension_numbers<[1], [0], [0], [1], [0, 0, 1, 1], [], []>} : vector<64x4xf32>, vector<4x4xf32>, vector<64x4xf32> -> vector<64x4xf32>
    %179 = arith.addf %177, %178 : vector<64x4xf32>
    %cst_94 = arith.constant dense<0.000000e+00> : vector<64x4xf32>
    %180 = tpu.matmul %56, %74, %cst_94 {dimension_numbers = #tpu.dot_dimension_numbers<[1], [0], [0], [1], [0, 0, 1, 1], [], []>} : vector<64x4xf32>, vector<4x4xf32>, vector<64x4xf32> -> vector<64x4xf32>
    %181 = arith.addf %179, %180 : vector<64x4xf32>
    %cst_95 = arith.constant dense<0.000000e+00> : vector<64x4xf32>
    %182 = tpu.matmul %58, %76, %cst_95 {dimension_numbers = #tpu.dot_dimension_numbers<[1], [0], [0], [1], [0, 0, 1, 1], [], []>} : vector<64x4xf32>, vector<4x4xf32>, vector<64x4xf32> -> vector<64x4xf32>
    %183 = arith.addf %181, %182 : vector<64x4xf32>
    %cst_96 = arith.constant dense<0.000000e+00> : vector<64x4xf32>
    %184 = tpu.matmul %60, %78, %cst_96 {dimension_numbers = #tpu.dot_dimension_numbers<[1], [0], [0], [1], [0, 0, 1, 1], [], []>} : vector<64x4xf32>, vector<4x4xf32>, vector<64x4xf32> -> vector<64x4xf32>
    %185 = arith.addf %183, %184 : vector<64x4xf32>
    %186 = vector.broadcast %79 : vector<1x4xf32> to vector<64x4xf32>
    %187 = arith.addf %185, %186 : vector<64x4xf32>
    %cst_97 = arith.constant 0.000000e+00 : f32
    %188 = vector.broadcast %cst_97 : f32 to vector<64x4xf32>
    %189 = arith.maximumf %187, %188 : vector<64x4xf32>
    %190 = vector.broadcast %80 : vector<1x4xf32> to vector<64x4xf32>
    %191 = arith.mulf %189, %190 : vector<64x4xf32>
    %192 = vector.broadcast %81 : vector<1x4xf32> to vector<64x4xf32>
    %193 = arith.addf %191, %192 : vector<64x4xf32>
    %194 = vector.shape_cast %193 : vector<64x4xf32> to vector<4x16x4xf32>
    %c0_98 = arith.constant 0 : index
    %c3_99 = arith.constant 3 : index
    %c0_100 = arith.constant 0 : index
    %c0_101 = arith.constant 0 : index
    %c0_102 = arith.constant 0 : index
    %195 = vector.load %arg9[%c0_98, %c3_99, %c0_100, %c0_101, %c0_102] : memref<1x4x4x16x4xf32, #tpu.memory_space<vmem>>, vector<1x1x4x16x4xf32>
    %196 = vector.shape_cast %195 : vector<1x1x4x16x4xf32> to vector<4x16x4xf32>
    %197 = vector.shape_cast %194 : vector<4x16x4xf32> to vector<1x1x4x16x4xf32>
    tpu.vector_store %arg9[%c0_98, %c3_99, %c0_100, %c0_101, %c0_102], %197 {strides = array<i32>} : memref<1x4x4x16x4xf32, #tpu.memory_space<vmem>>, vector<1x1x4x16x4xf32>,
    return
  }
  func.func @transform_0(%arg0: i32, %arg1: i32) -> (i32, i32, i32) {
    %c0_i32 = arith.constant 0 : i32
    %c0_i32_0 = arith.constant 0 : i32
    %c0_i32_1 = arith.constant 0 : i32
    return %arg0, %c0_i32, %c0_i32_0 : i32, i32, i32
  }
  func.func @transform_1(%arg0: i32, %arg1: i32) -> (i32, i32, i32) {
    %c0_i32 = arith.constant 0 : i32
    %c0_i32_0 = arith.constant 0 : i32
    %c0_i32_1 = arith.constant 0 : i32
    %c0_i32_2 = arith.constant 0 : i32
    return %c0_i32, %c0_i32_0, %c0_i32_1 : i32, i32, i32
  }
  func.func @transform_2(%arg0: i32, %arg1: i32) -> (i32, i32, i32) {
    %c0_i32 = arith.constant 0 : i32
    %c0_i32_0 = arith.constant 0 : i32
    %c0_i32_1 = arith.constant 0 : i32
    %c0_i32_2 = arith.constant 0 : i32
    return %c0_i32, %c0_i32_0, %c0_i32_1 : i32, i32, i32
  }
  func.func @transform_3(%arg0: i32, %arg1: i32) -> (i32, i32, i32) {
    %c0_i32 = arith.constant 0 : i32
    %c0_i32_0 = arith.constant 0 : i32
    %c0_i32_1 = arith.constant 0 : i32
    %c0_i32_2 = arith.constant 0 : i32
    return %c0_i32, %c0_i32_0, %c0_i32_1 : i32, i32, i32
  }
  func.func @transform_4(%arg0: i32, %arg1: i32) -> (i32, i32) {
    %c0_i32 = arith.constant 0 : i32
    %c0_i32_0 = arith.constant 0 : i32
    %c0_i32_1 = arith.constant 0 : i32
    return %c0_i32, %c0_i32_0 : i32, i32
  }
  func.func @transform_5(%arg0: i32, %arg1: i32) -> (i32, i32) {
    %c0_i32 = arith.constant 0 : i32
    %c0_i32_0 = arith.constant 0 : i32
    %c0_i32_1 = arith.constant 0 : i32
    return %c0_i32, %c0_i32_0 : i32, i32
  }
  func.func @transform_6(%arg0: i32, %arg1: i32) -> (i32, i32) {
    %c0_i32 = arith.constant 0 : i32
    %c0_i32_0 = arith.constant 0 : i32
    %c0_i32_1 = arith.constant 0 : i32
    return %c0_i32, %c0_i32_0 : i32, i32
  }
  func.func @transform_7(%arg0: i32, %arg1: i32) -> (i32, i32, i32, i32, i32) {
    %c0_i32 = arith.constant 0 : i32
    %c0_i32_0 = arith.constant 0 : i32
    %c0_i32_1 = arith.constant 0 : i32
    %c0_i32_2 = arith.constant 0 : i32
    return %arg0, %c0_i32, %arg1, %c0_i32_0, %c0_i32_1 : i32, i32, i32, i32, i32
  }
}

</mosaic_0001>

<bundles_post_ra>
// kernel: dcan_deconv_forward.1
= control target key start
LH: loop header
LB: loop body
LE: loop exit
PB: predicated region body
PF: predicated region fallthrough
CT: control target
= control target key end

     0   :  { %s7723_s24 = smov 0   ;;  %s7725_s25 = smov 0   ;;  %s9305_s0 = inlined_call_operand.vmem [shape: f32[2,432,8], index: 0, kind: input, shape index: {}]   ;;  %s9306_s1 = inlined_call_operand.vmem [shape: f32[4,8,4], index: 1, kind: input, shape index: {}]   ;;  %s9307_s2 = inlined_call_operand.vmem [shape: f32[18,24,4], index: 2, kind: input, shape index: {}]   ;;  %s9308_s3 = inlined_call_operand.vmem [shape: f32[9,4,4], index: 3, kind: input, shape index: {}]   ;;  %s9309_s4 = inlined_call_operand.vmem [shape: f32[1,4], index: 4, kind: input, shape index: {}]   ;;  %s9310_s5 = inlined_call_operand.vmem [shape: f32[1,4], index: 5, kind: input, shape index: {}]   ;;  %s9311_s6 = inlined_call_operand.vmem [shape: f32[1,4], index: 6, kind: input, shape index: {}]   ;;  %s9312_s7 = inlined_call_operand.vmem [shape: f32[2,4,16,16,4], index: 7, kind: output, shape index: {}]  }
   0x1   :  { %s7727_s26 = smov 0   ;;  %s7729_s27 = smov 0  }
   0x2   :  { %s7731_s28 = smov 0   ;;  %s7733_s29 = smov 0  }
   0x3   :  { %s7735_s30 = smov 0  }
   0x4 LB: > { %s26_s8 = sadd.s32 1, %s7673_s28  ;;  %s29_s9 = sadd.s32 1, %s7677_s29  ;;  %s7681_s30 = sphi %s7735_s30, %s17_s30   ;;  %s7677_s29 = sphi %s7733_s29, %s9440_s29   ;;  %s7673_s28 = sphi %s7731_s28, %s9439_s28   ;;  %s7669_s27 = sphi %s7729_s27, %s9438_s27   ;;  %s7665_s26 = sphi %s7727_s26, %s9437_s26   ;;  %s7661_s25 = sphi %s7725_s25, %s9436_s25   ;;  %s7657_s24 = sphi %s7723_s24, %s9435_s24  }
   0x5   : > { %p27_p0 = scmp.ge.s32.totalorder %s26_s8, 4  ;;  %s5843_s10 = sadd.s32 4294967295, %s7681_s30  }
   0x6   : > { %p200_p1 = scmp.ne.s32.totalorder %s7661_s25, %s7657_s24  ;;  %p201_p2 = scmp.eq.s32.totalorder %s5843_s10, 7 }
   0x7   : > { %s9442_s8 = smov (%p27_p0, %s26_s8), 0  ;;  %s9444_s9 = smov (!%p27_p0, %s29_s9), %s7677_s29 }
   0x8   : > { %s186_s11 = ssub.s32 %s7673_s28, %s9442_s8  ;;  %p31_p3 = scmp.ge.s32.totalorder %s9444_s9, 2 }
   0x9   : > { %p5847_p4 = scmp.ge.s32.totalorder %s7681_s30, 1  ;;  %p7769_p5 = por %p201_p2, %p200_p1 }
   0xa   : > { %p251_p6 = scmp.lt.s32.totalorder %s7681_s30, 9  ;;  %s9446_s9 = smov (%p31_p3, %s9444_s9), 0 }
   0xb   : > { %s185_s13 = ssub.s32 %s7677_s29, %s9446_s9  ;;  %s190_s15 = sadd.s32 1, %s7661_s25 }
   0xc   : > { %p252_p7 = pnand %p5847_p4, %p251_p6  ;;  %s187_s14 = sor.u32 %s186_s11, %s185_s13 }
   0xd   : > { %p188_p8 = scmp.eq.s32.totalorder %s187_s14, 0 }
   0xe   : > { %255 = sbr.rel (%p252_p7) target bundleno = 810 (0x32a), region = 48 }
   0xf   : > { %s7780_s16 = scalar_select %p188_p8, %s7661_s25, %s190_s15  }
  0x15   : > { %v329_v0 = vld [vmem:[%s9306_s1] sm:$0xff]  ;;  %v5870_v1 = vld [vmem:[%s9306_s1 + $0x8] sm:$0xff]  ;;  %p282_p9 = scmp.lt.s32.totalorder %s7669_s27, 1  ;;  %v5889_v2 = vld [vmem:[%s9306_s1 + $0x10] sm:$0xff]  ;;  %s289_s13 = smul.u32 96, %s7665_s26  ;;  %vm330_vm0 = vcmask 64512  }
  0x16   : > { %6694 = vmatprep.subr.mxu0 %v329_v0  ;;  %6723 = vmatprep.subr.mxu1 %v5870_v1  ;;  %v5908_v3 = vld [vmem:[%s9306_s1 + $0x18] sm:$0xff]  ;;  %v7897_v22 = vld [vmem:[%s9308_s3 + $0x4] sm:$0xf]  ;;  %vm1248_vm1 = vcmask 1043456   ;;  %v7910_v23 = vld [vmem:[%s9308_s3] sm:$0xf] }
  0x17   : > { %6695 = vmatpush3.msra.mxu0 %v329_v0  ;;  %6724 = vmatpush3.msra.mxu1 %v5870_v1  ;;  %s283_s11 = scalar_select %p282_p9, %s7669_s27, 1  ;;  %9359 = vst [vmem:[#allocation3_spill] sm:$0xff] %v7897_v22  ;;  %9360 = vst [vmem:[#allocation4_spill] sm:$0xff] %v7910_v23  ;;  %vm1011_vm2 = vcmask 1046528   ;;  %vm1064_vm3 = vcmask 1045504   ;;  %vm1231_vm4 = vcmask 31744  }
  0x18   : > { %6752 = vmatprep.subr.mxu0 %v5889_v2  ;;  %6781 = vmatprep.subr.mxu1 %v5908_v3 }
  0x19   : > { %s7570_s14 = smul.u32 432, %s283_s11  ;;  %s6293_s11 = sshll.u32 (%p7769_p5), %s7665_s26, 3 }
  0x1b   : > { %s286_s18 = scalar_lea.vmem %s9305_s0, %s7570_s14  ;;  %s7921_s14 = scalar_lea.vmem %s9307_s2, %s289_s13 }
  0x1c   : > { %s7802_s19 = scalar_lea.vmem %s286_s18, %s289_s13  ;;  %v7926_v32 = vld [vmem:[%s7921_s14 + $0x18] sm:$0xff]  ;;  %v7929_v33 = vld [vmem:[%s7921_s14 + $0x28] sm:$0xff]  ;;  %v7932_v34 = vld [vmem:[%s7921_s14 + $0x20] sm:$0xff] }
  0x1d   : > { %v291_v4 = vld [vmem:[%s7802_s19] sm:$0xff]  ;;  %v292_v5 = vld [vmem:[%s7802_s19 + $0x8] sm:$0xff]  ;;  %v293_v6 = vld [vmem:[%s7802_s19 + $0x10] sm:$0xff] }
  0x1e   : > { %6696 = vmatprep.mubr.msk.f32.mxu0 %vm330_vm0, %v291_v4  ;;  %6725 = vmatprep.mubr.msk.f32.mxu1 %vm330_vm0, %v291_v4  ;;  %v294_v7 = vld [vmem:[%s7802_s19 + $0x18] sm:$0xff]  ;;  %v295_v8 = vld [vmem:[%s7802_s19 + $0x20] sm:$0xff]  ;;  %v296_v9 = vld [vmem:[%s7802_s19 + $0x28] sm:$0xff] }
  0x1f   : > { %6697 = vmatmul.mubr.msk.f32.vlgmr.msra.gmra.mrb[0].mxu0 %vm330_vm0, %v292_v5  ;;  %6726 = vmatmul.mubr.msk.f32.vlgmr.msra.gmra.mrb[0].mxu1 %vm330_vm0, %v292_v5  ;;  %v297_v10 = vld [vmem:[%s7802_s19 + $0x30] sm:$0xff]  ;;  %v298_v11 = vld [vmem:[%s7802_s19 + $0x38] sm:$0xff]  ;;  %v299_v12 = vld [vmem:[%s7802_s19 + $0x40] sm:$0xff] }
  0x20   : > { %6753 = vmatpush3.msra.mxu0 %v5889_v2  ;;  %6782 = vmatpush3.msra.mxu1 %v5908_v3  ;;  %v300_v13 = vld [vmem:[%s7802_s19 + $0x48] sm:$0xff]  ;;  %v301_v14 = vld [vmem:[%s7802_s19 + $0x50] sm:$0xff]  ;;  %v302_v15 = vld [vmem:[%s7802_s19 + $0x58] sm:$0xff] }
  0x21   : > { %6699 = vmatprep.mubr.msk.f32.mxu0 %vm330_vm0, %v293_v6  ;;  %6728 = vmatprep.mubr.msk.f32.mxu1 %vm330_vm0, %v293_v6  ;;  %v303_v16 = vld [vmem:[%s7802_s19 + $0x60] sm:$0xff]  ;;  %v304_v17 = vld [vmem:[%s7802_s19 + $0x68] sm:$0xff]  ;;  %v305_v18 = vld [vmem:[%s7802_s19 + $0x70] sm:$0xff] }
  0x22   : > { %v306_v19 = vld [vmem:[%s7802_s19 + $0x78] sm:$0xff]  ;;  %v307_v20 = vld [vmem:[%s7802_s19 + $0x80] sm:$0xff]  ;;  %v308_v21 = vld [vmem:[%s7802_s19 + $0x88] sm:$0xff]  ;;  %6810 = vmatprep.subr.msk.mxu0 %vm1248_vm1, %v7897_v22  ;;  %6936 = vmatprep.subr.msk.mxu1 %vm1248_vm1, %v7897_v22  ;;  %s279_s19 = sand.u32 1, %s7657_s24  }
  0x23   : > { %6700 = vmatmul.mubr.msk.f32.gmra.mrb[2].mxu0 %vm330_vm0, %v294_v7  ;;  %6729 = vmatmul.mubr.msk.f32.gmra.mrb[2].mxu1 %vm330_vm0, %v294_v7  ;;  %v7942_v44 = vld [vmem:[%s7921_s14 + $0x38] sm:$0xff]  ;;  %v7945_v47 = vld [vmem:[%s7921_s14 + $0x30] sm:$0xff]  ;;  %v7962_v1 = vld [vmem:[%s7921_s14 + $0x40] sm:$0xff]  ;;  %s5848_s22 = sshll.u32 %s279_s19, 8 }
  0x24   : > { %6702 = vmatprep.mubr.msk.f32.mxu0 %vm330_vm0, %v295_v8  ;;  %6731 = vmatprep.mubr.msk.f32.mxu1 %vm330_vm0, %v295_v8  ;;  %s9065_s10 = scalar_lea.vmem [#allocation2], %s5848_s22 }
  0x27   : > { %6703 = vmatmul.mubr.msk.f32.gmra.mrb[4].mxu0 %vm330_vm0, %v296_v9  ;;  %6732 = vmatmul.mubr.msk.f32.gmra.mrb[4].mxu1 %vm330_vm0, %v296_v9 }
  0x28   : > { %6705 = vmatprep.mubr.msk.f32.mxu0 %vm330_vm0, %v297_v10  ;;  %6734 = vmatprep.mubr.msk.f32.mxu1 %vm330_vm0, %v297_v10 }
  0x2b   : > { %6706 = vmatmul.mubr.msk.f32.gmra.mrb[6].mxu0 %vm330_vm0, %v298_v11  ;;  %6735 = vmatmul.mubr.msk.f32.gmra.mrb[6].mxu1 %vm330_vm0, %v298_v11 }
  0x2c   : > { %6708 = vmatprep.mubr.msk.f32.mxu0 %vm330_vm0, %v299_v12  ;;  %6737 = vmatprep.mubr.msk.f32.mxu1 %vm330_vm0, %v299_v12 }
  0x2f   : > { %6709 = vmatmul.mubr.msk.f32.gmra.mrb[8].mxu0 %vm330_vm0, %v300_v13  ;;  %6738 = vmatmul.mubr.msk.f32.gmra.mrb[8].mxu1 %vm330_vm0, %v300_v13 }
  0x30   : > { %6711 = vmatprep.mubr.msk.f32.mxu0 %vm330_vm0, %v301_v14  ;;  %6740 = vmatprep.mubr.msk.f32.mxu1 %vm330_vm0, %v301_v14 }
  0x33   : > { %6712 = vmatmul.mubr.msk.f32.gmra.mrb[10].mxu0 %vm330_vm0, %v302_v15  ;;  %6741 = vmatmul.mubr.msk.f32.gmra.mrb[10].mxu1 %vm330_vm0, %v302_v15 }
  0x34   : > { %6714 = vmatprep.mubr.msk.f32.mxu0 %vm330_vm0, %v303_v16  ;;  %6743 = vmatprep.mubr.msk.f32.mxu1 %vm330_vm0, %v303_v16 }
  0x37   : > { %6715 = vmatmul.mubr.msk.f32.gmra.mrb[12].mxu0 %vm330_vm0, %v304_v17  ;;  %6744 = vmatmul.mubr.msk.f32.gmra.mrb[12].mxu1 %vm330_vm0, %v304_v17 }
  0x38   : > { %6717 = vmatprep.mubr.msk.f32.mxu0 %vm330_vm0, %v305_v18  ;;  %6746 = vmatprep.mubr.msk.f32.mxu1 %vm330_vm0, %v305_v18 }
  0x3b   : > { %6718 = vmatmul.mubr.msk.f32.gmra.mrb[14].mxu0 %vm330_vm0, %v306_v19  ;;  %6747 = vmatmul.mubr.msk.f32.gmra.mrb[14].mxu1 %vm330_vm0, %v306_v19 }
  0x3c   : > { %6720 = vmatprep.mubr.msk.f32.mxu0 %vm330_vm0, %v307_v20  ;;  %6749 = vmatprep.mubr.msk.f32.mxu1 %vm330_vm0, %v307_v20 }
  0x3f   : > { %6721 = vmatmul.mubr.msk.f32.gmra.mrb[16].mxu0 %vm330_vm0, %v308_v21  ;;  %6750 = vmatmul.mubr.msk.f32.gmra.mrb[16].mxu1 %vm330_vm0, %v308_v21 }
  0x40   : > { %6754 = vmatprep.mubr.msk.f32.mxu0 %vm330_vm0, %v291_v4  ;;  %6783 = vmatprep.mubr.msk.f32.mxu1 %vm330_vm0, %v291_v4 }
  0x43   : > { %6755 = vmatmul.mubr.msk.f32.vlgmr.msra.gmra.mrb[18].mxu0 %vm330_vm0, %v292_v5  ;;  %6784 = vmatmul.mubr.msk.f32.vlgmr.msra.gmra.mrb[18].mxu1 %vm330_vm0, %v292_v5 }
  0x44   : > { %6757 = vmatprep.mubr.msk.f32.mxu0 %vm330_vm0, %v293_v6  ;;  %6786 = vmatprep.mubr.msk.f32.mxu1 %vm330_vm0, %v293_v6 }
  0x45   : > { %6811 = vmatpush3.msk.msra.mxu0 %vm1248_vm1, %v7897_v22  ;;  %6937 = vmatpush3.msk.msra.mxu1 %vm1248_vm1, %v7897_v22 }
  0x46   : > { %6824 = vmatprep.subr.msk.mxu0 %vm1248_vm1, %v7910_v23  ;;  %6950 = vmatprep.subr.msk.mxu1 %vm1248_vm1, %v7910_v23 }
  0x47   : > { %6758 = vmatmul.mubr.msk.f32.gmra.mrb[20].mxu0 %vm330_vm0, %v294_v7  ;;  %6787 = vmatmul.mubr.msk.f32.gmra.mrb[20].mxu1 %vm330_vm0, %v294_v7  ;;  %v7970_v7 = vld [vmem:[%s7921_s14 + $0x48] sm:$0xff] }
  0x48   : > { %6760 = vmatprep.mubr.msk.f32.mxu0 %vm330_vm0, %v295_v8  ;;  %6789 = vmatprep.mubr.msk.f32.mxu1 %vm330_vm0, %v295_v8 }
  0x4b   : > { %6761 = vmatmul.mubr.msk.f32.gmra.mrb[22].mxu0 %vm330_vm0, %v296_v9  ;;  %6790 = vmatmul.mubr.msk.f32.gmra.mrb[22].mxu1 %vm330_vm0, %v296_v9 }
  0x4c   : > { %6763 = vmatprep.mubr.msk.f32.mxu0 %vm330_vm0, %v297_v10  ;;  %6792 = vmatprep.mubr.msk.f32.mxu1 %vm330_vm0, %v297_v10 }
  0x4f   : > { %6764 = vmatmul.mubr.msk.f32.gmra.mrb[24].mxu0 %vm330_vm0, %v298_v11  ;;  %6793 = vmatmul.mubr.msk.f32.gmra.mrb[24].mxu1 %vm330_vm0, %v298_v11 }
  0x50   : > { %6766 = vmatprep.mubr.msk.f32.mxu0 %vm330_vm0, %v299_v12  ;;  %6795 = vmatprep.mubr.msk.f32.mxu1 %vm330_vm0, %v299_v12 }
  0x53   : > { %6767 = vmatmul.mubr.msk.f32.gmra.mrb[26].mxu0 %vm330_vm0, %v300_v13  ;;  %6796 = vmatmul.mubr.msk.f32.gmra.mrb[26].mxu1 %vm330_vm0, %v300_v13 }
  0x54   : > { %6769 = vmatprep.mubr.msk.f32.mxu0 %vm330_vm0, %v301_v14  ;;  %6798 = vmatprep.mubr.msk.f32.mxu1 %vm330_vm0, %v301_v14 }
  0x57   : > { %6770 = vmatmul.mubr.msk.f32.gmra.mrb[28].mxu0 %vm330_vm0, %v302_v15  ;;  %6799 = vmatmul.mubr.msk.f32.gmra.mrb[28].mxu1 %vm330_vm0, %v302_v15  ;;  %v7986_v15 = vld [vmem:[%s7921_s14 + $0x58] sm:$0xff] }
  0x58   : > { %6772 = vmatprep.mubr.msk.f32.mxu0 %vm330_vm0, %v303_v16  ;;  %6801 = vmatprep.mubr.msk.f32.mxu1 %vm330_vm0, %v303_v16 }
  0x5b   : > { %6773 = vmatmul.mubr.msk.f32.gmra.mrb[30].mxu0 %vm330_vm0, %v304_v17  ;;  %6802 = vmatmul.mubr.msk.f32.gmra.mrb[30].mxu1 %vm330_vm0, %v304_v17  ;;  %v7990_v17 = vld [vmem:[%s7921_s14 + $0x50] sm:$0xff] }
  0x5c   : > { %6775 = vmatprep.mubr.msk.f32.mxu0 %vm330_vm0, %v305_v18  ;;  %6804 = vmatprep.mubr.msk.f32.mxu1 %vm330_vm0, %v305_v18 }
  0x5f   : > { %6776 = vmatmul.mubr.msk.f32.gmra.mrb[32].mxu0 %vm330_vm0, %v306_v19  ;;  %6805 = vmatmul.mubr.msk.f32.gmra.mrb[32].mxu1 %vm330_vm0, %v306_v19 }
  0x60   : > { %6778 = vmatprep.mubr.msk.f32.mxu0 %vm330_vm0, %v307_v20  ;;  %6807 = vmatprep.mubr.msk.f32.mxu1 %vm330_vm0, %v307_v20 }
  0x63   : > { %6779 = vmatmul.mubr.msk.f32.gmra.mrb[34].mxu0 %vm330_vm0, %v308_v21  ;;  %6808 = vmatmul.mubr.msk.f32.gmra.mrb[34].mxu1 %vm330_vm0, %v308_v21 }
  0xf2   : > { %v6698_v24 = vpop.f32.mrb[0].mxu0  ;;  %v6727_v25 = vpop.f32.mrb[0].mxu1 }
  0xf3   : > { %v451_v26 = vpop.f32.mrb[1].mxu0  ;;  %v605_v27 = vpop.f32.mrb[1].mxu1 }
  0xf6   : > { %v6701_v28 = vpop.f32.mrb[2].mxu0  ;;  %v7923_v29 = vpop.f32.mrb[2].mxu1 }
  0xf7   : > { %v459_v30 = vpop.f32.mrb[3].mxu0  ;;  %v613_v31 = vpop.f32.mrb[3].mxu1  ;;  %v464_v37 = vadd.f32 %v6701_v28, %v7926_v32 }
  0xf9   : > { %v1097_v52 = vrot.slane %v464_v37, 1  ;;  %v1149_v58 = vrot.slane %v464_v37, 2 }
  0xfa   : > { %v6704_v35 = vpop.f32.mrb[4].mxu0  ;;  %v6733_v36 = vpop.f32.mrb[4].mxu1 }
  0xfb   : > { %v474_v38 = vadd.f32 %v6704_v35, %v7929_v33  ;;  %v628_v39 = vadd.f32 %v6733_v36, %v7929_v33  ;;  %v468_v40 = vpop.f32.mrb[5].mxu0  ;;  %v622_v41 = vpop.f32.mrb[5].mxu1 }
  0xfc   : > { %v469_v42 = vadd.f32 %v468_v40, %v7932_v34  ;;  %v7939_v43 = vadd.f32 %v622_v41, %v7932_v34  ;;  %v8014_v41 = vld [vmem:[%s7921_s14 + $0x60] sm:$0xff] }
  0xfd   : > { %v1100_v45 = vrot.slane %v474_v38, 1  ;;  %v1152_v46 = vrot.slane %v474_v38, 2  ;;  %v1132_v53 = vrot.slane %v628_v39, 1  ;;  %v8011_v39 = vld [vmem:[%s7921_s14 + $0x68] sm:$0xff] }
  0xfe   : > { %v1098_v48 = vrot.slane %v469_v42, 1  ;;  %v1150_v49 = vrot.slane %v469_v42, 2  ;;  %v6707_v50 = vpop.f32.mrb[6].mxu0  ;;  %v6736_v51 = vpop.f32.mrb[6].mxu1  ;;  %v9316_v54 = vrot.slane %v7939_v43, 1 }
  0xff   : > { %v484_v55 = vadd.f32 %v6707_v50, %v7942_v44  ;;  %v478_v56 = vpop.f32.mrb[7].mxu0  ;;  %v7949_v57 = vpop.f32.mrb[7].mxu1  ;;  %v7959_v0 = vadd.f32 %v6736_v51, %v7942_v44 }
 0x100   : > { %v7952_v59 = vsel %vm1011_vm2, %v1098_v48, %v1100_v45  ;;  %v7955_v60 = vsel %vm1064_vm3, %v1150_v49, %v1152_v46  ;;  %v479_v61 = vadd.f32 %v478_v56, %v7945_v47  ;;  %v7965_v2 = vsel %vm1011_vm2, %v1097_v52, %v1098_v48 }
 0x101   : > { %9361 = vst [vmem:[#allocation5_spill] sm:$0xff] %v7955_v60  ;;  %v1103_v62 = vrot.slane %v484_v55, 1  ;;  %v1155_v63 = vrot.slane %v484_v55, 2  ;;  %v7975_v10 = vsel %vm1011_vm2, %v9316_v54, %v1132_v53  ;;  %v7978_v11 = vsel %vm1064_vm3, %v1149_v58, %v1150_v49 }
 0x102   : > { %v1102_v3 = vrot.slane %v479_v61, 1  ;;  %v1154_v4 = vrot.slane %v479_v61, 2  ;;  %v6710_v5 = vpop.f32.mrb[8].mxu0  ;;  %v7967_v6 = vpop.f32.mrb[8].mxu1  ;;  %9362 = vst [vmem:[#allocation6_spill] sm:$0xff] %v7975_v10  ;;  %9363 = vst [vmem:[#allocation7_spill] sm:$0xff] %v7978_v11 }
 0x103   : > { %v488_v8 = vpop.f32.mrb[9].mxu0  ;;  %v642_v9 = vpop.f32.mrb[9].mxu1  ;;  %v9314_v16 = vrot.slane %v7959_v0, 1  ;;  %v494_v19 = vadd.f32 %v6710_v5, %v7970_v7  ;;  %v326_v5 = vld [vmem:[%s7921_s14 + $0x78] sm:$0xff] }
 0x104   : > { %v7981_v12 = vsel %vm1011_vm2, %v1102_v3, %v1103_v62  ;;  %v489_v13 = vadd.f32 %v488_v8, %v7962_v1  ;;  %v643_v14 = vadd.f32 %v642_v9, %v7962_v1  ;;  %v7993_v18 = vsel %vm1064_vm3, %v1154_v4, %v1155_v63 }
 0x105   : > { %9364 = vst [vmem:[#allocation8_spill] sm:$0xff] %v7993_v18  ;;  %v1107_v45 = vrot.slane %v494_v19, 1  ;;  %v1159_v8 = vrot.slane %v494_v19, 2 }
 0x106   : > { %v1105_v20 = vrot.slane %v489_v13, 1  ;;  %v1157_v21 = vrot.slane %v489_v13, 2  ;;  %v1137_v24 = vrot.slane %v643_v14, 1  ;;  %v6713_v25 = vpop.f32.mrb[10].mxu0  ;;  %v6742_v26 = vpop.f32.mrb[10].mxu1  ;;  %v8036_v14 = vld [vmem:[%s7921_s14 + $0x70] sm:$0xff] }
 0x107   : > { %v504_v27 = vadd.f32 %v6713_v25, %v7986_v15  ;;  %v658_v28 = vadd.f32 %v6742_v26, %v7986_v15  ;;  %v498_v30 = vpop.f32.mrb[11].mxu0  ;;  %v652_v31 = vpop.f32.mrb[11].mxu1 }
 0x108   : > { %v7999_v35 = vsel %vm1011_vm2, %v1103_v62, %v1105_v20  ;;  %v8004_v36 = vsel %vm1011_vm2, %v9314_v16, %v1137_v24  ;;  %v499_v37 = vadd.f32 %v498_v30, %v7990_v17  ;;  %v8008_v38 = vadd.f32 %v652_v31, %v7990_v17 }
 0x109   : > { %9365 = vst [vmem:[#allocation9_spill] sm:$0xff] %v8004_v36  ;;  %v1110_v40 = vrot.slane %v504_v27, 1  ;;  %v8017_v42 = vsel %vm1064_vm3, %v1155_v63, %v1157_v21  ;;  %v1142_v46 = vrot.slane %v658_v28, 1  ;;  %v1162_v52 = vrot.slane %v504_v27, 2 }
 0x10a   : > { %9366 = vst [vmem:[#allocation10_spill] sm:$0xff] %v8017_v42  ;;  %v1108_v48 = vrot.slane %v499_v37, 1  ;;  %v9313_v49 = vrot.slane %v8008_v38, 1  ;;  %v6716_v50 = vpop.f32.mrb[12].mxu0  ;;  %v6745_v51 = vpop.f32.mrb[12].mxu1  ;;  %v1160_v53 = vrot.slane %v499_v37, 2 }
 0x10b   : > { %v514_v55 = vadd.f32 %v6716_v50, %v8011_v39  ;;  %v8022_v56 = vadd.f32 %v6745_v51, %v8011_v39  ;;  %v508_v58 = vpop.f32.mrb[13].mxu0  ;;  %v662_v61 = vpop.f32.mrb[13].mxu1  ;;  %v327_v50 = vld [vmem:[%s7921_s14 + $0x80] sm:$0xff] }
 0x10c   : > { %v8025_v62 = vsel %vm1011_vm2, %v1107_v45, %v1108_v48  ;;  %v8028_v63 = vsel %vm1011_vm2, %v1108_v48, %v1110_v40  ;;  %v509_v3 = vadd.f32 %v508_v58, %v8014_v41  ;;  %v8032_v4 = vadd.f32 %v662_v61, %v8014_v41  ;;  %v328_v48 = vld [vmem:[%s7921_s14 + $0x88] sm:$0xff] }
 0x10d   : > { %9367 = vst [vmem:[#allocation11_spill] sm:$0xff] %v8022_v56  ;;  %9368 = vst [vmem:[#allocation12_spill] sm:$0xff] %v8028_v63  ;;  %v1113_v9 = vrot.slane %v514_v55, 1  ;;  %v1165_v13 = vrot.slane %v514_v55, 2  ;;  %v8041_v26 = vsel %vm1011_vm2, %v9313_v49, %v1142_v46  ;;  %v8048_v31 = vsel %vm1064_vm3, %v1159_v8, %v1160_v53 }
 0x10e   : > { %9369 = vst [vmem:[#allocation13_spill] sm:$0xff] %v8032_v4  ;;  %v1112_v20 = vrot.slane %v509_v3, 1  ;;  %v1164_v21 = vrot.slane %v509_v3, 2  ;;  %v6719_v24 = vpop.f32.mrb[14].mxu0  ;;  %v6748_v25 = vpop.f32.mrb[14].mxu1  ;;  %9370 = vst [vmem:[#allocation14_spill] sm:$0xff] %v8041_v26  ;;  %v8051_v37 = vsel %vm1064_vm3, %v1160_v53, %v1162_v52 }
 0x10f   : > { %v8043_v27 = vadd.f32 %v6719_v24, %v326_v5  ;;  %v8045_v28 = vadd.f32 %v6748_v25, %v326_v5  ;;  %v518_v19 = vpop.f32.mrb[15].mxu0  ;;  %v672_v30 = vpop.f32.mrb[15].mxu1  ;;  %9372 = vst [vmem:[#allocation16_spill] sm:$0xff] %v8048_v31  ;;  %9373 = vst [vmem:[#allocation17_spill] sm:$0xff] %v8051_v37  ;;  %v9315_v55 = vrot.slane %v8022_v56, 1 }
 0x110   : > { %v8054_v40 = vsel %vm1011_vm2, %v1112_v20, %v1113_v9  ;;  %v519_v45 = vadd.f32 %v518_v19, %v8036_v14  ;;  %v673_v46 = vadd.f32 %v672_v30, %v8036_v14  ;;  %v8061_v51 = vsel %vm1064_vm3, %v1164_v21, %v1165_v13 }
 0x111   : > { %9371 = vst [vmem:[#allocation15_spill] sm:$0xff] %v8045_v28  ;;  %9374 = vst [vmem:[#allocation18_spill] sm:$0xff] %v8054_v40 }
 0x112   : > { %9375 = vst [vmem:[#allocation19_spill] sm:$0xff] %v8061_v51  ;;  %v1115_v58 = vrot.slane %v519_v45, 1  ;;  %v1167_v61 = vrot.slane %v519_v45, 2  ;;  %v1147_v3 = vrot.slane %v673_v46, 1  ;;  %v6722_v52 = vpop.f32.mrb[16].mxu0  ;;  %v6751_v53 = vpop.f32.mrb[16].mxu1 }
 0x113   : > { %v534_v5 = vadd.f32 %v6722_v52, %v328_v48  ;;  %v688_v8 = vadd.f32 %v6751_v53, %v328_v48  ;;  %v528_v20 = vpop.f32.mrb[17].mxu0  ;;  %v682_v24 = vpop.f32.mrb[17].mxu1  ;;  %v312_v45 = vld [vmem:[%s7921_s14 + $0x8] sm:$0xff]  ;;  %v1193_v46 = vrot.slane %v8043_v27, 1  ;;  %v1206_v52 = vrot.slane %v8043_v27, 2  ;;  %v311_v53 = vld [vmem:[%s7921_s14] sm:$0xff] }
 0x114   : > { %v8065_v25 = vsel %vm1011_vm2, %v1113_v9, %v1115_v58  ;;  %v8070_v21 = vsel %vm1011_vm2, %v9315_v55, %v1147_v3  ;;  %v529_v19 = vadd.f32 %v528_v20, %v327_v50  ;;  %v8072_v30 = vadd.f32 %v682_v24, %v327_v50 }
 0x115   : > { %9376 = vst [vmem:[#allocation20_spill] sm:$0xff] %v8065_v25  ;;  %9377 = vst [vmem:[#allocation21_spill] sm:$0xff] %v8070_v21  ;;  %v1196_v48 = vrot.slane %v534_v5, 1  ;;  %v8079_v49 = vsel %vm1064_vm3, %v1165_v13, %v1167_v61  ;;  %v1201_v9 = vrot.slane %v8045_v28, 1  ;;  %v1204_v58 = vrot.slane %v688_v8, 1 }
 0x116   : > { %9378 = vst [vmem:[#allocation22_spill] sm:$0xff] %v8072_v30  ;;  %9379 = vst [vmem:[#allocation23_spill] sm:$0xff] %v8079_v49  ;;  %v1194_v16 = vrot.slane %v529_v19, 1  ;;  %v1202_v3 = vrot.slane %v8072_v30, 1  ;;  %v6756_v20 = vpop.f32.mrb[18].mxu0  ;;  %v6785_v50 = vpop.f32.mrb[18].mxu1 }
 0x117   : > { %v1209_v24 = vrot.slane %v534_v5, 2  ;;  %v1207_v55 = vrot.slane %v529_v19, 2  ;;  %v765_v54 = vadd.f32 %v6756_v20, %v312_v45  ;;  %v8083_v22 = vadd.f32 %v6785_v50, %v312_v45  ;;  %v759_v27 = vpop.f32.mrb[19].mxu0  ;;  %v913_v51 = vpop.f32.mrb[19].mxu1  ;;  %v313_v5 = vld [vmem:[%s7921_s14 + $0x10] sm:$0xff]  ;;  %s6289_s14 = sshll.u32 (%p7769_p5), %s7669_s27, 7 }
 0x118   : > { %v760_v37 = vadd.f32 %v759_v27, %v311_v53  ;;  %v8085_v31 = vadd.f32 %v913_v51, %v311_v53  ;;  %v8088_v13 = vsel %vm1011_vm2, %v1193_v46, %v1194_v16  ;;  %v8091_v61 = vsel %vm1011_vm2, %v1194_v16, %v1196_v48  ;;  %s5615_s12 = sadd.s32 (%p7769_p5), %s6293_s11, %s6289_s14 }
 0x119   : > { %9380 = vst [vmem:[#allocation24_spill] sm:$0xff] %v8088_v13  ;;  %9381 = vst [vmem:[#allocation25_spill] sm:$0xff] %v8091_v61  ;;  %v1013_v8 = vrot.slane %v765_v54, 1  ;;  %v1066_v30 = vrot.slane %v765_v54, 2  ;;  %v1045_v28 = vrot.slane %v8083_v22, 1  ;;  %v8096_v19 = vsel %vm1011_vm2, %v1201_v9, %v1202_v3  ;;  %s6290_s13 = sshll.u32 (%p7769_p5), %s5615_s12, 3 }
 0x11a   : > { %9382 = vst [vmem:[#allocation26_spill] sm:$0xff] %v8096_v19  ;;  %v1012_v45 = vrot.slane %v760_v37, 1  ;;  %v1065_v20 = vrot.slane %v760_v37, 2  ;;  %v1044_v50 = vrot.slane %v8085_v31, 1  ;;  %v6759_v51 = vpop.f32.mrb[20].mxu0  ;;  %v6788_v53 = vpop.f32.mrb[20].mxu1  ;;  %v8100_v46 = vsel %vm1011_vm2, %v1202_v3, %v1204_v58  ;;  %s9227_s18 = scalar_lea.vmem (%p7769_p5), %s9312_s7, %s6290_s13 }
 0x11b   : > { %9383 = vst [vmem:[#allocation27_spill] sm:$0xff] %v8100_v46  ;;  %v769_v27 = vpop.f32.mrb[21].mxu0  ;;  %v923_v16 = vpop.f32.mrb[21].mxu1  ;;  %v8103_v48 = vsel %vm1064_vm3, %v1206_v52, %v1207_v55  ;;  %v8106_v54 = vsel %vm1064_vm3, %v1207_v55, %v1209_v24  ;;  %v8115_v13 = vadd.f32 %v6759_v51, %v7926_v32  ;;  %v8125_v52 = vadd.f32 %v6788_v53, %v7926_v32 }
 0x11c   : > { %9384 = vst [vmem:[#allocation28_spill] sm:$0xff] %v8103_v48  ;;  %9385 = vst [vmem:[#allocation29_spill] sm:$0xff] %v8106_v54  ;;  %v770_v61 = vadd.f32 %v769_v27, %v313_v5  ;;  %v924_v9 = vadd.f32 %v923_v16, %v313_v5  ;;  %v8109_v19 = vsel %vm1011_vm2, %v1012_v45, %v1013_v8 }
 0x11d   : > { %v8112_v37 = vsel %vm1011_vm2, %v1044_v50, %v1045_v28  ;;  %6812 = vmatprep.mubr.msk.f32.mxu0 %vm1231_vm4, %v8109_v19  ;;  %v8122_v55 = vsel %vm1064_vm3, %v1065_v20, %v1066_v30 }
 0x11e   : > { %6938 = vmatprep.mubr.msk.f32.mxu1 %vm1231_vm4, %v8112_v37  ;;  %v1015_v58 = vrot.slane %v770_v61, 1  ;;  %v1068_v3 = vrot.slane %v770_v61, 2  ;;  %v1047_v24 = vrot.slane %v924_v9, 1  ;;  %v6762_v5 = vpop.f32.mrb[22].mxu0  ;;  %v6791_v45 = vpop.f32.mrb[22].mxu1 }
 0x11f   : > { %v785_v50 = vadd.f32 %v6762_v5, %v7929_v33  ;;  %v939_v51 = vadd.f32 %v6791_v45, %v7929_v33  ;;  %v779_v27 = vpop.f32.mrb[23].mxu0  ;;  %v933_v16 = vpop.f32.mrb[23].mxu1  ;;  %v8142_v9 = vld [vmem:[%s9308_s3 + $0x8] sm:$0xf]  ;;  %v1017_v33 = vrot.slane %v8115_v13, 1  ;;  %v1070_v5 = vrot.slane %v8115_v13, 2 }
 0x120   : > { %v8130_v54 = vsel %vm1011_vm2, %v1013_v8, %v1015_v58  ;;  %v8133_v20 = vsel %vm1064_vm3, %v1066_v30, %v1068_v3  ;;  %v8136_v53 = vsel %vm1011_vm2, %v1045_v28, %v1047_v24  ;;  %v780_v61 = vadd.f32 %v779_v27, %v7932_v34 }
 0x121   : > { %v1020_v45 = vrot.slane %v785_v50, 1  ;;  %v8147_v8 = vadd.f32 %v933_v16, %v7932_v34  ;;  %6813 = vmatmul.mubr.msk.f32.vlgmr.msra.gmra.mrb[36].mxu0 %vm1231_vm4, %v8130_v54  ;;  %6939 = vmatmul.mubr.msk.f32.vlgmr.msra.gmra.mrb[36].mxu1 %vm1231_vm4, %v8136_v53  ;;  %v1049_v28 = vrot.slane %v8125_v52, 1  ;;  %v1073_v30 = vrot.slane %v785_v50, 2 }
 0x122   : > { %v1052_v58 = vrot.slane %v939_v51, 1  ;;  %v1018_v3 = vrot.slane %v780_v61, 1  ;;  %v6765_v24 = vpop.f32.mrb[24].mxu0  ;;  %v6794_v27 = vpop.f32.mrb[24].mxu1  ;;  %6825 = vmatpush3.msk.msra.mxu0 %vm1248_vm1, %v7910_v23  ;;  %6951 = vmatpush3.msk.msra.mxu1 %vm1248_vm1, %v7910_v23  ;;  %v1071_v34 = vrot.slane %v780_v61, 2 }
 0x123   : > { %v1050_v13 = vrot.slane %v8147_v8, 1  ;;  %v795_v16 = vadd.f32 %v6765_v24, %v7942_v44  ;;  %v8161_v48 = vadd.f32 %v6794_v27, %v7942_v44  ;;  %v789_v46 = vpop.f32.mrb[25].mxu0  ;;  %v943_v50 = vpop.f32.mrb[25].mxu1  ;;  %6838 = vmatprep.subr.msk.mxu0 %vm1248_vm1, %v8142_v9  ;;  %6964 = vmatprep.subr.msk.mxu1 %vm1248_vm1, %v8142_v9 }
 0x124   : > { %v8168_v51 = vsel %vm1011_vm2, %v1017_v33, %v1018_v3  ;;  %v8171_v61 = vsel %vm1011_vm2, %v1018_v3, %v1020_v45  ;;  %v790_v23 = vadd.f32 %v789_v46, %v7945_v47  ;;  %v8175_v24 = vadd.f32 %v943_v50, %v7945_v47 }
 0x125   : > { %v1023_v44 = vrot.slane %v795_v16, 1  ;;  %v1076_v27 = vrot.slane %v795_v16, 2  ;;  %v1055_v49 = vrot.slane %v8161_v48, 1  ;;  %6815 = vmatprep.mubr.msk.f32.mxu0 %vm1231_vm4, %v8168_v51  ;;  %v8181_v42 = vsel %vm1011_vm2, %v1049_v28, %v1050_v13 }
 0x126   : > { %v1022_v33 = vrot.slane %v790_v23, 1  ;;  %v1075_v18 = vrot.slane %v790_v23, 2  ;;  %v1054_v45 = vrot.slane %v8175_v24, 1  ;;  %6941 = vmatprep.mubr.msk.f32.mxu1 %vm1231_vm4, %v8181_v42  ;;  %v6768_v46 = vpop.f32.mrb[26].mxu0  ;;  %v6797_v3 = vpop.f32.mrb[26].mxu1  ;;  %6816 = vmatmul.mubr.msk.f32.gmra.mrb[38].mxu0 %vm1231_vm4, %v8171_v61  ;;  %v8189_v16 = vsel %vm1011_vm2, %v1050_v13, %v1052_v58 }
 0x127   : > { %v805_v50 = vadd.f32 %v6768_v46, %v7970_v7  ;;  %6942 = vmatmul.mubr.msk.f32.gmra.mrb[38].mxu1 %vm1231_vm4, %v8189_v16  ;;  %v799_v28 = vpop.f32.mrb[27].mxu0  ;;  %v953_v23 = vpop.f32.mrb[27].mxu1  ;;  %v8195_v60 = vsel %vm1064_vm3, %v1070_v5, %v1071_v34  ;;  %v8198_v11 = vsel %vm1064_vm3, %v1071_v34, %v1073_v30  ;;  %v8216_v30 = vadd.f32 %v6797_v3, %v7970_v7 }
 0x128   : > { %v8201_v21 = vsel %vm1011_vm2, %v1022_v33, %v1023_v44  ;;  %v800_v26 = vadd.f32 %v799_v28, %v7962_v1  ;;  %v954_v58 = vadd.f32 %v953_v23, %v7962_v1  ;;  %v8206_v13 = vsel %vm1011_vm2, %v1054_v45, %v1055_v49 }
 0x129   : > { %6818 = vmatprep.mubr.msk.f32.mxu0 %vm1231_vm4, %v8201_v21  ;;  %6944 = vmatprep.mubr.msk.f32.mxu1 %vm1231_vm4, %v8206_v13  ;;  %v8213_v5 = vsel %vm1064_vm3, %v1075_v18, %v1076_v27  ;;  %v1027_v23 = vrot.slane %v805_v50, 1 }
 0x12a   : > { %v1025_v34 = vrot.slane %v800_v26, 1  ;;  %v1078_v33 = vrot.slane %v800_v26, 2  ;;  %v1057_v46 = vrot.slane %v954_v58, 1  ;;  %v6771_v28 = vpop.f32.mrb[28].mxu0  ;;  %v6800_v1 = vpop.f32.mrb[28].mxu1 }
 0x12b   : > { %v815_v45 = vadd.f32 %v6771_v28, %v7986_v15  ;;  %v969_v36 = vadd.f32 %v6800_v1, %v7986_v15  ;;  %v809_v10 = vpop.f32.mrb[29].mxu0  ;;  %v963_v25 = vpop.f32.mrb[29].mxu1 }
 0x12c   : > { %v8221_v56 = vsel %vm1011_vm2, %v1023_v44, %v1025_v34  ;;  %v8224_v18 = vsel %vm1011_vm2, %v1055_v49, %v1057_v46  ;;  %v810_v3 = vadd.f32 %v809_v10, %v7990_v17  ;;  %v8228_v26 = vadd.f32 %v963_v25, %v7990_v17 }
 0x12d   : > { %v1030_v58 = vrot.slane %v815_v45, 1  ;;  %v1083_v40 = vrot.slane %v815_v45, 2  ;;  %v1062_v4 = vrot.slane %v969_v36, 1  ;;  %6819 = vmatmul.mubr.msk.f32.gmra.mrb[40].mxu0 %vm1231_vm4, %v8221_v56  ;;  %6945 = vmatmul.mubr.msk.f32.gmra.mrb[40].mxu1 %vm1231_vm4, %v8224_v18  ;;  %v8235_v15 = vsel %vm1064_vm3, %v1076_v27, %v1078_v33 }
 0x12e   : > { %9386 = vst [vmem:[#allocation30_spill] sm:$0xff] %v8228_v26  ;;  %v1059_v49 = vrot.slane %v8216_v30, 1  ;;  %v1028_v44 = vrot.slane %v810_v3, 1  ;;  %v1081_v34 = vrot.slane %v810_v3, 2  ;;  %v1060_v10 = vrot.slane %v8228_v26, 1  ;;  %v6774_v17 = vpop.f32.mrb[30].mxu0 }
 0x12f   : > { %v6803_v25 = vpop.f32.mrb[30].mxu1  ;;  %v1080_v46 = vrot.slane %v805_v50, 2  ;;  %v825_v36 = vadd.f32 %v6774_v17, %v8011_v39  ;;  %v819_v28 = vpop.f32.mrb[31].mxu0 }
 0x130   : > { %v8241_v1 = vadd.f32 %v6803_v25, %v8011_v39  ;;  %v973_v45 = vpop.f32.mrb[31].mxu1  ;;  %v8244_v63 = vsel %vm1011_vm2, %v1027_v23, %v1028_v44  ;;  %v8247_v27 = vsel %vm1011_vm2, %v1028_v44, %v1030_v58  ;;  %v8250_v33 = vsel %vm1011_vm2, %v1059_v49, %v1060_v10 }
 0x131   : > { %v8253_v3 = vsel %vm1011_vm2, %v1060_v10, %v1062_v4  ;;  %6821 = vmatprep.mubr.msk.f32.mxu0 %vm1231_vm4, %v8244_v63  ;;  %6947 = vmatprep.mubr.msk.f32.mxu1 %vm1231_vm4, %v8250_v33  ;;  %v8260_v39 = vsel %vm1064_vm3, %v1080_v46, %v1081_v34  ;;  %v8263_v50 = vsel %vm1064_vm3, %v1081_v34, %v1083_v40  ;;  %v1173_v4 = vrot.slane %v825_v36, 1 }
 0x132   : > { %6822 = vmatmul.mubr.msk.f32.gmra.mrb[42].mxu0 %vm1231_vm4, %v8247_v27  ;;  %6948 = vmatmul.mubr.msk.f32.gmra.mrb[42].mxu1 %vm1231_vm4, %v8253_v3  ;;  %v820_v23 = vadd.f32 %v819_v28, %v8014_v41  ;;  %v6777_v58 = vpop.f32.mrb[32].mxu0  ;;  %v8271_v49 = vadd.f32 %v973_v45, %v8014_v41  ;;  %v6806_v44 = vpop.f32.mrb[32].mxu1  ;;  %v1186_v40 = vrot.slane %v825_v36, 2  ;;  %v9345_v28 = vrot.slane %v8241_v1, 1  ;;  %v8287_v41 = vld [vmem:[%s9308_s3 + $0xc] sm:$0xf] }
 0x133   : > { %6826 = vmatprep.mubr.msk.f32.mxu0 %vm1231_vm4, %v8085_v31  ;;  %6952 = vmatprep.mubr.msk.f32.mxu1 %vm1231_vm4, %v8109_v19  ;;  %v829_v34 = vpop.f32.mrb[33].mxu0  ;;  %v983_v10 = vpop.f32.mrb[33].mxu1 }
 0x134   : > { %9387 = vst [vmem:[#allocation31_spill] sm:$0xff] %v8271_v49  ;;  %v1172_v17 = vrot.slane %v820_v23, 1  ;;  %v1185_v25 = vrot.slane %v820_v23, 2  ;;  %v830_v46 = vadd.f32 %v829_v34, %v8036_v14  ;;  %v984_v58 = vadd.f32 %v983_v10, %v8036_v14 }
 0x136   : > { %6827 = vmatmul.mubr.msk.f32.vlgmr.msra.gmra.mrb[36].mxu0 %vm1231_vm4, %v8083_v22  ;;  %6953 = vmatmul.mubr.msk.f32.vlgmr.msra.gmra.mrb[36].mxu1 %vm1231_vm4, %v8130_v54  ;;  %v1175_v31 = vrot.slane %v830_v46, 1  ;;  %v1188_v19 = vrot.slane %v830_v46, 2  ;;  %v8290_v36 = vsel %vm1011_vm2, %v1172_v17, %v1173_v4  ;;  %v6780_v45 = vpop.f32.mrb[34].mxu0  ;;  %v6809_v23 = vpop.f32.mrb[34].mxu1  ;;  %v1183_v22 = vrot.slane %v984_v58, 1  ;;  %v9396_v58 = vld [vmem:[#allocation6_spill] sm:$0xff] }
 0x137   : > { %6839 = vmatpush3.msk.msra.mxu0 %vm1248_vm1, %v8142_v9  ;;  %6965 = vmatpush3.msk.msra.mxu1 %vm1248_vm1, %v8142_v9  ;;  %v8297_v14 = vsel %vm1064_vm3, %v1185_v25, %v1186_v40  ;;  %v838_v54 = vpop.f32.mrb[35].mxu0  ;;  %v992_v44 = vpop.f32.mrb[35].mxu1 }
 0x138   : > { %6829 = vmatprep.mubr.msk.f32.mxu0 %vm1231_vm4, %v8125_v52  ;;  %6955 = vmatprep.mubr.msk.f32.mxu1 %vm1231_vm4, %v8168_v51  ;;  %v8304_v34 = vsel %vm1011_vm2, %v1173_v4, %v1175_v31  ;;  %v8307_v10 = vsel %vm1064_vm3, %v1186_v40, %v1188_v19  ;;  %v8316_v17 = vsel %vm1011_vm2, %v9345_v28, %v1183_v22  ;;  %v8349_v4 = vld [vmem:[%s9308_s3 + $0x10] sm:$0xf]  ;;  %v9395_v40 = vrot.slane %v7939_v43, 1  ;;  %v8458_v31 = vld [vmem:[%s9308_s3 + $0x18] sm:$0xf]  ;;  %v9407_v28 = vld [vmem:[#allocation8_spill] sm:$0xff] }
 0x139   : > { %6852 = vmatprep.subr.msk.mxu0 %vm1248_vm1, %v8287_v41  ;;  %6978 = vmatprep.subr.msk.mxu1 %vm1248_vm1, %v8287_v41  ;;  %9388 = vst [vmem:[#allocation32_spill] sm:$0xff] %v8349_v4  ;;  %v9398_v19 = vrot.slane %v7959_v0, 1  ;;  %v9399_v54 = vld [vmem:[#allocation9_spill] sm:$0xff]  ;;  %v9400_v44 = vrot.slane %v8008_v38, 1 }
 0x13a   : > { %6830 = vmatmul.mubr.msk.f32.gmra.mrb[38].mxu0 %vm1231_vm4, %v8147_v8  ;;  %6956 = vmatmul.mubr.msk.f32.gmra.mrb[38].mxu1 %vm1231_vm4, %v8171_v61 }
 0x13b   : > { %6832 = vmatprep.mubr.msk.f32.mxu0 %vm1231_vm4, %v8175_v24  ;;  %6958 = vmatprep.mubr.msk.f32.mxu1 %vm1231_vm4, %v8201_v21 }
 0x13e   : > { %6833 = vmatmul.mubr.msk.f32.gmra.mrb[40].mxu0 %vm1231_vm4, %v8161_v48  ;;  %6959 = vmatmul.mubr.msk.f32.gmra.mrb[40].mxu1 %vm1231_vm4, %v8221_v56 }
 0x13f   : > { %6835 = vmatprep.mubr.msk.f32.mxu0 %vm1231_vm4, %v8216_v30  ;;  %6961 = vmatprep.mubr.msk.f32.mxu1 %vm1231_vm4, %v8244_v63 }
 0x142   : > { %6836 = vmatmul.mubr.msk.f32.gmra.mrb[42].mxu0 %vm1231_vm4, %v8228_v26  ;;  %6962 = vmatmul.mubr.msk.f32.gmra.mrb[42].mxu1 %vm1231_vm4, %v8247_v27 }
 0x143   : > { %6840 = vmatprep.mubr.msk.f32.mxu0 %vm1231_vm4, %v8112_v37  ;;  %6966 = vmatprep.mubr.msk.f32.mxu1 %vm1231_vm4, %v8122_v55  ;;  %v8381_v37 = vadd.f32 %v7923_v29, %v7926_v32  ;;  %v8393_v55 = vadd.f32 %v7949_v57, %v7945_v47  ;;  %v8402_v29 = vld [vmem:[%s9308_s3 + $0x14] sm:$0xf]  ;;  %v8414_v32 = vadd.f32 %v7967_v6, %v7970_v7  ;;  %v9390_v47 = vld [vmem:[#allocation12_spill] sm:$0xff]  ;;  %v9392_v6 = vld [vmem:[#allocation18_spill] sm:$0xff] }
 0x144   : > { %9389 = vst [vmem:[#allocation33_spill] sm:$0xff] %v8402_v29  ;;  %v9391_v57 = vld [vmem:[#allocation13_spill] sm:$0xff]  ;;  %9397 = vst [vmem:[#allocation12_spill] sm:$0xff] %v8458_v31 }
 0x145   : > { %v1129_v7 = vrot.slane %v8381_v37, 1  ;;  %v1134_v46 = vrot.slane %v8393_v55, 1  ;;  %v1139_v23 = vrot.slane %v8414_v32, 1  ;;  %v1144_v22 = vrot.slane %v9391_v57, 1 }
 0x146   : > { %6841 = vmatmul.mubr.msk.f32.vlgmr.msra.gmra.mrb[36].mxu0 %vm1231_vm4, %v8136_v53  ;;  %6967 = vmatmul.mubr.msk.f32.vlgmr.msra.gmra.mrb[36].mxu1 %vm1231_vm4, %v8133_v20  ;;  %v9393_v20 = vld [vmem:[#allocation11_spill] sm:$0xff]  ;;  %v9394_v53 = vld [vmem:[#allocation20_spill] sm:$0xff] }
 0x147   : > { %6853 = vmatpush3.msk.msra.mxu0 %vm1248_vm1, %v8287_v41  ;;  %6979 = vmatpush3.msk.msra.mxu1 %vm1248_vm1, %v8287_v41  ;;  %v8444_v25 = vsel %vm1011_vm2, %v1129_v7, %v9395_v40  ;;  %v8467_v45 = vsel %vm1011_vm2, %v1134_v46, %v9398_v19  ;;  %v8486_v7 = vsel %vm1011_vm2, %v1139_v23, %v9400_v44  ;;  %v9401_v40 = vld [vmem:[#allocation14_spill] sm:$0xff]  ;;  %v9402_v46 = vrot.slane %v9393_v20, 1  ;;  %v9403_v23 = vld [vmem:[#allocation21_spill] sm:$0xff]  ;;  %v9404_v44 = vld [vmem:[#allocation7_spill] sm:$0xff] }
 0x148   : > { %6843 = vmatprep.mubr.msk.f32.mxu0 %vm1231_vm4, %v8181_v42  ;;  %6969 = vmatprep.mubr.msk.f32.mxu1 %vm1231_vm4, %v8195_v60 }
 0x149   : > { %6866 = vmatprep.subr.msk.mxu0 %vm1248_vm1, %v8349_v4  ;;  %6992 = vmatprep.subr.msk.mxu1 %vm1248_vm1, %v8349_v4  ;;  %v8499_v19 = vsel %vm1011_vm2, %v1144_v22, %v9402_v46  ;;  %v9405_v22 = vld [vmem:[#allocation5_spill] sm:$0xff]  ;;  %v8520_v46 = vld [vmem:[%s9308_s3 + $0x1c] sm:$0xf] }
 0x14a   : > { %6844 = vmatmul.mubr.msk.f32.gmra.mrb[38].mxu0 %vm1231_vm4, %v8189_v16  ;;  %6970 = vmatmul.mubr.msk.f32.gmra.mrb[38].mxu1 %vm1231_vm4, %v8198_v11  ;;  %9406 = vst [vmem:[#allocation13_spill] sm:$0xff] %v8520_v46 }
 0x14b   : > { %6846 = vmatprep.mubr.msk.f32.mxu0 %vm1231_vm4, %v8206_v13  ;;  %6972 = vmatprep.mubr.msk.f32.mxu1 %vm1231_vm4, %v8213_v5 }
 0x14e   : > { %6847 = vmatmul.mubr.msk.f32.gmra.mrb[40].mxu0 %vm1231_vm4, %v8224_v18  ;;  %6973 = vmatmul.mubr.msk.f32.gmra.mrb[40].mxu1 %vm1231_vm4, %v8235_v15 }
 0x14f   : > { %6849 = vmatprep.mubr.msk.f32.mxu0 %vm1231_vm4, %v8250_v33  ;;  %6975 = vmatprep.mubr.msk.f32.mxu1 %vm1231_vm4, %v8260_v39 }
 0x152   : > { %6850 = vmatmul.mubr.msk.f32.gmra.mrb[42].mxu0 %vm1231_vm4, %v8253_v3  ;;  %6976 = vmatmul.mubr.msk.f32.gmra.mrb[42].mxu1 %vm1231_vm4, %v8263_v50 }
 0x153   : > { %6854 = vmatprep.mubr.msk.f32.mxu0 %vm1231_vm4, %v8381_v37  ;;  %6980 = vmatprep.mubr.msk.f32.mxu1 %vm1231_vm4, %v7965_v2 }
 0x156   : > { %6855 = vmatmul.mubr.msk.f32.vlgmr.msra.gmra.mrb[36].mxu0 %vm1231_vm4, %v7939_v43  ;;  %6981 = vmatmul.mubr.msk.f32.vlgmr.msra.gmra.mrb[36].mxu1 %vm1231_vm4, %v7952_v59 }
 0x157   : > { %6867 = vmatpush3.msk.msra.mxu0 %vm1248_vm1, %v8349_v4  ;;  %6993 = vmatpush3.msk.msra.mxu1 %vm1248_vm1, %v8349_v4  ;;  %v9410_v4 = vld [vmem:[#allocation17_spill] sm:$0xff] }
 0x158   : > { %6857 = vmatprep.mubr.msk.f32.mxu0 %vm1231_vm4, %v8393_v55  ;;  %6983 = vmatprep.mubr.msk.f32.mxu1 %vm1231_vm4, %v7981_v12 }
 0x159   : > { %6880 = vmatprep.subr.msk.mxu0 %vm1248_vm1, %v8402_v29  ;;  %7006 = vmatprep.subr.msk.mxu1 %vm1248_vm1, %v8402_v29 }
 0x15a   : > { %6858 = vmatmul.mubr.msk.f32.gmra.mrb[38].mxu0 %vm1231_vm4, %v7959_v0  ;;  %6984 = vmatmul.mubr.msk.f32.gmra.mrb[38].mxu1 %vm1231_vm4, %v7999_v35 }
 0x15b   : > { %6860 = vmatprep.mubr.msk.f32.mxu0 %vm1231_vm4, %v8414_v32  ;;  %6986 = vmatprep.mubr.msk.f32.mxu1 %vm1231_vm4, %v8025_v62 }
 0x15e   : > { %6861 = vmatmul.mubr.msk.f32.gmra.mrb[40].mxu0 %vm1231_vm4, %v8008_v38  ;;  %6987 = vmatmul.mubr.msk.f32.gmra.mrb[40].mxu1 %vm1231_vm4, %v9390_v47 }
 0x15f   : > { %6863 = vmatprep.mubr.msk.f32.mxu0 %vm1231_vm4, %v9391_v57  ;;  %6989 = vmatprep.mubr.msk.f32.mxu1 %vm1231_vm4, %v9392_v6 }
 0x162   : > { %6864 = vmatmul.mubr.msk.f32.gmra.mrb[42].mxu0 %vm1231_vm4, %v9393_v20  ;;  %6990 = vmatmul.mubr.msk.f32.gmra.mrb[42].mxu1 %vm1231_vm4, %v9394_v53 }
 0x163   : > { %6868 = vmatprep.mubr.msk.f32.mxu0 %vm1231_vm4, %v7965_v2  ;;  %6994 = vmatprep.mubr.msk.f32.mxu1 %vm1231_vm4, %v8444_v25 }
 0x166   : > { %6869 = vmatmul.mubr.msk.f32.vlgmr.msra.gmra.mrb[36].mxu0 %vm1231_vm4, %v7952_v59  ;;  %6995 = vmatmul.mubr.msk.f32.vlgmr.msra.gmra.mrb[36].mxu1 %vm1231_vm4, %v9396_v58 }
 0x167   : > { %6881 = vmatpush3.msk.msra.mxu0 %vm1248_vm1, %v8402_v29  ;;  %7007 = vmatpush3.msk.msra.mxu1 %vm1248_vm1, %v8402_v29  ;;  %v9408_v29 = vld [vmem:[#allocation10_spill] sm:$0xff] }
 0x168   : > { %6871 = vmatprep.mubr.msk.f32.mxu0 %vm1231_vm4, %v7981_v12  ;;  %6997 = vmatprep.mubr.msk.f32.mxu1 %vm1231_vm4, %v8467_v45 }
 0x169   : > { %6894 = vmatprep.subr.msk.mxu0 %vm1248_vm1, %v8458_v31  ;;  %7020 = vmatprep.subr.msk.mxu1 %vm1248_vm1, %v8458_v31 }
 0x16a   : > { %6872 = vmatmul.mubr.msk.f32.gmra.mrb[38].mxu0 %vm1231_vm4, %v7999_v35  ;;  %6998 = vmatmul.mubr.msk.f32.gmra.mrb[38].mxu1 %vm1231_vm4, %v9399_v54 }
 0x16b   : > { %6874 = vmatprep.mubr.msk.f32.mxu0 %vm1231_vm4, %v8025_v62  ;;  %7000 = vmatprep.mubr.msk.f32.mxu1 %vm1231_vm4, %v8486_v7 }
 0x16e   : > { %6875 = vmatmul.mubr.msk.f32.gmra.mrb[40].mxu0 %vm1231_vm4, %v9390_v47  ;;  %7001 = vmatmul.mubr.msk.f32.gmra.mrb[40].mxu1 %vm1231_vm4, %v9401_v40 }
 0x16f   : > { %6877 = vmatprep.mubr.msk.f32.mxu0 %vm1231_vm4, %v9392_v6  ;;  %7003 = vmatprep.mubr.msk.f32.mxu1 %vm1231_vm4, %v8499_v19 }
 0x172   : > { %6878 = vmatmul.mubr.msk.f32.gmra.mrb[42].mxu0 %vm1231_vm4, %v9394_v53  ;;  %7004 = vmatmul.mubr.msk.f32.gmra.mrb[42].mxu1 %vm1231_vm4, %v9403_v23 }
 0x173   : > { %6882 = vmatprep.mubr.msk.f32.mxu0 %vm1231_vm4, %v8444_v25  ;;  %7008 = vmatprep.mubr.msk.f32.mxu1 %vm1231_vm4, %v9404_v44 }
 0x176   : > { %6883 = vmatmul.mubr.msk.f32.vlgmr.msra.gmra.mrb[36].mxu0 %vm1231_vm4, %v9396_v58  ;;  %7009 = vmatmul.mubr.msk.f32.vlgmr.msra.gmra.mrb[36].mxu1 %vm1231_vm4, %v9405_v22 }
 0x177   : > { %6895 = vmatpush3.msk.msra.mxu0 %vm1248_vm1, %v8458_v31  ;;  %7021 = vmatpush3.msk.msra.mxu1 %vm1248_vm1, %v8458_v31  ;;  %v9409_v31 = vld [vmem:[#allocation16_spill] sm:$0xff] }
 0x178   : > { %6885 = vmatprep.mubr.msk.f32.mxu0 %vm1231_vm4, %v8467_v45  ;;  %7011 = vmatprep.mubr.msk.f32.mxu1 %vm1231_vm4, %v9407_v28  ;;  %v9411_v28 = vld [vmem:[#allocation19_spill] sm:$0xff] }
 0x179   : > { %6908 = vmatprep.subr.msk.mxu0 %vm1248_vm1, %v8520_v46  ;;  %7034 = vmatprep.subr.msk.mxu1 %vm1248_vm1, %v8520_v46 }
 0x17a   : > { %6886 = vmatmul.mubr.msk.f32.gmra.mrb[38].mxu0 %vm1231_vm4, %v9399_v54  ;;  %7012 = vmatmul.mubr.msk.f32.gmra.mrb[38].mxu1 %vm1231_vm4, %v9408_v29  ;;  %v9412_v29 = vld [vmem:[#allocation23_spill] sm:$0xff] }
 0x17b   : > { %6888 = vmatprep.mubr.msk.f32.mxu0 %vm1231_vm4, %v8486_v7  ;;  %7014 = vmatprep.mubr.msk.f32.mxu1 %vm1231_vm4, %v9409_v31 }
 0x17e   : > { %6889 = vmatmul.mubr.msk.f32.gmra.mrb[40].mxu0 %vm1231_vm4, %v9401_v40  ;;  %7015 = vmatmul.mubr.msk.f32.gmra.mrb[40].mxu1 %vm1231_vm4, %v9410_v4 }
 0x17f   : > { %6891 = vmatprep.mubr.msk.f32.mxu0 %vm1231_vm4, %v8499_v19  ;;  %7017 = vmatprep.mubr.msk.f32.mxu1 %vm1231_vm4, %v9411_v28  ;;  %v8565_v28 = vld [vmem:[%s9308_s3 + $0x20] sm:$0xf] }
 0x180   : > { %9413 = vst [vmem:[#allocation18_spill] sm:$0xff] %v8565_v28 }
 0x182   : > { %6892 = vmatmul.mubr.msk.f32.gmra.mrb[42].mxu0 %vm1231_vm4, %v9403_v23  ;;  %7018 = vmatmul.mubr.msk.f32.gmra.mrb[42].mxu1 %vm1231_vm4, %v9412_v29 }
 0x183   : > { %6896 = vmatprep.mubr.msk.f32.mxu0 %vm1231_vm4, %v8125_v52  ;;  %7022 = vmatprep.mubr.msk.f32.mxu1 %vm1231_vm4, %v8168_v51 }
 0x186   : > { %6897 = vmatmul.mubr.msk.f32.vlgmr.msra.gmra.mrb[36].mxu0 %vm1231_vm4, %v8147_v8  ;;  %7023 = vmatmul.mubr.msk.f32.vlgmr.msra.gmra.mrb[36].mxu1 %vm1231_vm4, %v8171_v61 }
 0x187   : > { %6909 = vmatpush3.msk.msra.mxu0 %vm1248_vm1, %v8520_v46  ;;  %7035 = vmatpush3.msk.msra.mxu1 %vm1248_vm1, %v8520_v46  ;;  %v9414_v46 = vld [vmem:[#allocation3_spill] sm:$0xff] }
 0x188   : > { %6899 = vmatprep.mubr.msk.f32.mxu0 %vm1231_vm4, %v8175_v24  ;;  %7025 = vmatprep.mubr.msk.f32.mxu1 %vm1231_vm4, %v8201_v21 }
 0x189   : > { %6922 = vmatprep.subr.msk.mxu0 %vm1248_vm1, %v8565_v28  ;;  %7048 = vmatprep.subr.msk.mxu1 %vm1248_vm1, %v8565_v28 }
 0x18a   : > { %6900 = vmatmul.mubr.msk.f32.gmra.mrb[38].mxu0 %vm1231_vm4, %v8161_v48  ;;  %7026 = vmatmul.mubr.msk.f32.gmra.mrb[38].mxu1 %vm1231_vm4, %v8221_v56 }
 0x18b   : > { %6902 = vmatprep.mubr.msk.f32.mxu0 %vm1231_vm4, %v8216_v30  ;;  %7028 = vmatprep.mubr.msk.f32.mxu1 %vm1231_vm4, %v8244_v63 }
 0x18e   : > { %6903 = vmatmul.mubr.msk.f32.gmra.mrb[40].mxu0 %vm1231_vm4, %v8228_v26  ;;  %7029 = vmatmul.mubr.msk.f32.gmra.mrb[40].mxu1 %vm1231_vm4, %v8247_v27  ;;  %v1180_v26 = vrot.slane %v8271_v49, 1 }
 0x18f   : > { %7031 = vmatprep.mubr.msk.f32.mxu1 %vm1231_vm4, %v8290_v36  ;;  %6905 = vmatprep.mubr.msk.f32.mxu0 %vm1231_vm4, %v8271_v49 }
 0x192   : > { %6906 = vmatmul.mubr.msk.f32.gmra.mrb[42].mxu0 %vm1231_vm4, %v8241_v1  ;;  %7032 = vmatmul.mubr.msk.f32.gmra.mrb[42].mxu1 %vm1231_vm4, %v8304_v34 }
 0x193   : > { %6910 = vmatprep.mubr.msk.f32.mxu0 %vm1231_vm4, %v8168_v51  ;;  %7036 = vmatprep.mubr.msk.f32.mxu1 %vm1231_vm4, %v8181_v42 }
 0x196   : > { %6911 = vmatmul.mubr.msk.f32.vlgmr.msra.gmra.mrb[36].mxu0 %vm1231_vm4, %v8171_v61  ;;  %7037 = vmatmul.mubr.msk.f32.vlgmr.msra.gmra.mrb[36].mxu1 %vm1231_vm4, %v8189_v16 }
 0x197   : > { %6923 = vmatpush3.msk.msra.mxu0 %vm1248_vm1, %v8565_v28  ;;  %7049 = vmatpush3.msk.msra.mxu1 %vm1248_vm1, %v8565_v28  ;;  %v9415_v28 = vrot.slane %v8241_v1, 1 }
 0x198   : > { %6913 = vmatprep.mubr.msk.f32.mxu0 %vm1231_vm4, %v8201_v21  ;;  %7039 = vmatprep.mubr.msk.f32.mxu1 %vm1231_vm4, %v8206_v13 }
 0x199   : > { %7062 = vmatprep.subr.msk.mxu0 %vm1248_vm1, %v9414_v46  ;;  %7188 = vmatprep.subr.msk.mxu1 %vm1248_vm1, %v9414_v46  ;;  %v8635_v49 = vsel %vm1011_vm2, %v1180_v26, %v9415_v28  ;;  %v9416_v26 = vld [vmem:[#allocation4_spill] sm:$0xff] }
 0x19a   : > { %6914 = vmatmul.mubr.msk.f32.gmra.mrb[38].mxu0 %vm1231_vm4, %v8221_v56  ;;  %7040 = vmatmul.mubr.msk.f32.gmra.mrb[38].mxu1 %vm1231_vm4, %v8224_v18 }
 0x19b   : > { %6916 = vmatprep.mubr.msk.f32.mxu0 %vm1231_vm4, %v8244_v63  ;;  %7042 = vmatprep.mubr.msk.f32.mxu1 %vm1231_vm4, %v8250_v33 }
 0x19e   : > { %6917 = vmatmul.mubr.msk.f32.gmra.mrb[40].mxu0 %vm1231_vm4, %v8247_v27  ;;  %7043 = vmatmul.mubr.msk.f32.gmra.mrb[40].mxu1 %vm1231_vm4, %v8253_v3 }
 0x19f   : > { %6919 = vmatprep.mubr.msk.f32.mxu0 %vm1231_vm4, %v8290_v36  ;;  %7045 = vmatprep.mubr.msk.f32.mxu1 %vm1231_vm4, %v8635_v49 }
 0x1a2   : > { %6920 = vmatmul.mubr.msk.f32.gmra.mrb[42].mxu0 %vm1231_vm4, %v8304_v34  ;;  %7046 = vmatmul.mubr.msk.f32.gmra.mrb[42].mxu1 %vm1231_vm4, %v8316_v17 }
 0x1a3   : > { %6924 = vmatprep.mubr.msk.f32.mxu0 %vm1231_vm4, %v8181_v42  ;;  %7050 = vmatprep.mubr.msk.f32.mxu1 %vm1231_vm4, %v8195_v60 }
 0x1a6   : > { %6925 = vmatmul.mubr.msk.f32.vlgmr.msra.gmra.mrb[36].mxu0 %vm1231_vm4, %v8189_v16  ;;  %7051 = vmatmul.mubr.msk.f32.vlgmr.msra.gmra.mrb[36].mxu1 %vm1231_vm4, %v8198_v11 }
 0x1a7   : > { %7063 = vmatpush3.msk.msra.mxu0 %vm1248_vm1, %v9414_v46  ;;  %7189 = vmatpush3.msk.msra.mxu1 %vm1248_vm1, %v9414_v46 }
 0x1a8   : > { %6927 = vmatprep.mubr.msk.f32.mxu0 %vm1231_vm4, %v8206_v13  ;;  %7053 = vmatprep.mubr.msk.f32.mxu1 %vm1231_vm4, %v8213_v5 }
 0x1a9   : > { %7076 = vmatprep.subr.msk.mxu0 %vm1248_vm1, %v9416_v26  ;;  %7202 = vmatprep.subr.msk.mxu1 %vm1248_vm1, %v9416_v26 }
 0x1aa   : > { %6928 = vmatmul.mubr.msk.f32.gmra.mrb[38].mxu0 %vm1231_vm4, %v8224_v18  ;;  %7054 = vmatmul.mubr.msk.f32.gmra.mrb[38].mxu1 %vm1231_vm4, %v8235_v15 }
 0x1ab   : > { %6930 = vmatprep.mubr.msk.f32.mxu0 %vm1231_vm4, %v8250_v33  ;;  %7056 = vmatprep.mubr.msk.f32.mxu1 %vm1231_vm4, %v8260_v39 }
 0x1ae   : > { %6931 = vmatmul.mubr.msk.f32.gmra.mrb[40].mxu0 %vm1231_vm4, %v8253_v3  ;;  %7057 = vmatmul.mubr.msk.f32.gmra.mrb[40].mxu1 %vm1231_vm4, %v8263_v50 }
 0x1af   : > { %6933 = vmatprep.mubr.msk.f32.mxu0 %vm1231_vm4, %v8635_v49  ;;  %7059 = vmatprep.mubr.msk.f32.mxu1 %vm1231_vm4, %v8297_v14 }
 0x1b2   : > { %6934 = vmatmul.mubr.msk.f32.gmra.mrb[42].mxu0 %vm1231_vm4, %v8316_v17  ;;  %7060 = vmatmul.mubr.msk.f32.gmra.mrb[42].mxu1 %vm1231_vm4, %v8307_v10 }
 0x1b3   : > { %7064 = vmatprep.mubr.msk.f32.mxu0 %vm1231_vm4, %v7965_v2  ;;  %7190 = vmatprep.mubr.msk.f32.mxu1 %vm1231_vm4, %v8444_v25 }
 0x1b6   : > { %7065 = vmatmul.mubr.msk.f32.vlgmr.msra.gmra.mrb[44].mxu0 %vm1231_vm4, %v7952_v59  ;;  %7191 = vmatmul.mubr.msk.f32.vlgmr.msra.gmra.mrb[44].mxu1 %vm1231_vm4, %v9396_v58 }
 0x1b7   : > { %7077 = vmatpush3.msk.msra.mxu0 %vm1248_vm1, %v9416_v26  ;;  %7203 = vmatpush3.msk.msra.mxu1 %vm1248_vm1, %v9416_v26 }
 0x1b8   : > { %7067 = vmatprep.mubr.msk.f32.mxu0 %vm1231_vm4, %v7981_v12  ;;  %7193 = vmatprep.mubr.msk.f32.mxu1 %vm1231_vm4, %v8467_v45 }
 0x1b9   : > { %7090 = vmatprep.subr.msk.mxu0 %vm1248_vm1, %v8142_v9  ;;  %7216 = vmatprep.subr.msk.mxu1 %vm1248_vm1, %v8142_v9 }
 0x1ba   : > { %7068 = vmatmul.mubr.msk.f32.gmra.mrb[46].mxu0 %vm1231_vm4, %v7999_v35  ;;  %7194 = vmatmul.mubr.msk.f32.gmra.mrb[46].mxu1 %vm1231_vm4, %v9399_v54 }
 0x1bb   : > { %7070 = vmatprep.mubr.msk.f32.mxu0 %vm1231_vm4, %v8025_v62  ;;  %7196 = vmatprep.mubr.msk.f32.mxu1 %vm1231_vm4, %v8486_v7 }
 0x1be   : > { %7071 = vmatmul.mubr.msk.f32.gmra.mrb[48].mxu0 %vm1231_vm4, %v9390_v47  ;;  %7197 = vmatmul.mubr.msk.f32.gmra.mrb[48].mxu1 %vm1231_vm4, %v9401_v40 }
 0x1bf   : > { %7073 = vmatprep.mubr.msk.f32.mxu0 %vm1231_vm4, %v9392_v6  ;;  %7199 = vmatprep.mubr.msk.f32.mxu1 %vm1231_vm4, %v8499_v19 }
 0x1c2   : > { %7074 = vmatmul.mubr.msk.f32.gmra.mrb[50].mxu0 %vm1231_vm4, %v9394_v53  ;;  %7200 = vmatmul.mubr.msk.f32.gmra.mrb[50].mxu1 %vm1231_vm4, %v9403_v23 }
 0x1c3   : > { %7078 = vmatprep.mubr.msk.f32.mxu0 %vm1231_vm4, %v8381_v37  ;;  %7204 = vmatprep.mubr.msk.f32.mxu1 %vm1231_vm4, %v7965_v2  ;;  %v9419_v2 = vld [vmem:[#allocation10_spill] sm:$0xff] }
 0x1c6   : > { %7079 = vmatmul.mubr.msk.f32.vlgmr.msra.gmra.mrb[44].mxu0 %vm1231_vm4, %v7939_v43  ;;  %7205 = vmatmul.mubr.msk.f32.vlgmr.msra.gmra.mrb[44].mxu1 %vm1231_vm4, %v7952_v59  ;;  %v9417_v43 = vld [vmem:[#allocation8_spill] sm:$0xff] }
 0x1c7   : > { %7091 = vmatpush3.msk.msra.mxu0 %vm1248_vm1, %v8142_v9  ;;  %7217 = vmatpush3.msk.msra.mxu1 %vm1248_vm1, %v8142_v9  ;;  %v9418_v59 = vld [vmem:[#allocation32_spill] sm:$0xff]  ;;  %v9420_v9 = vld [vmem:[#allocation19_spill] sm:$0xff] }
 0x1c8   : > { %7081 = vmatprep.mubr.msk.f32.mxu0 %vm1231_vm4, %v8393_v55  ;;  %7207 = vmatprep.mubr.msk.f32.mxu1 %vm1231_vm4, %v7981_v12 }
 0x1c9   : > { %7104 = vmatprep.subr.msk.mxu0 %vm1248_vm1, %v8287_v41  ;;  %7230 = vmatprep.subr.msk.mxu1 %vm1248_vm1, %v8287_v41 }
 0x1ca   : > { %7082 = vmatmul.mubr.msk.f32.gmra.mrb[46].mxu0 %vm1231_vm4, %v7959_v0  ;;  %7208 = vmatmul.mubr.msk.f32.gmra.mrb[46].mxu1 %vm1231_vm4, %v7999_v35 }
 0x1cb   : > { %7084 = vmatprep.mubr.msk.f32.mxu0 %vm1231_vm4, %v8414_v32  ;;  %7210 = vmatprep.mubr.msk.f32.mxu1 %vm1231_vm4, %v8025_v62 }
 0x1ce   : > { %7085 = vmatmul.mubr.msk.f32.gmra.mrb[48].mxu0 %vm1231_vm4, %v8008_v38  ;;  %7211 = vmatmul.mubr.msk.f32.gmra.mrb[48].mxu1 %vm1231_vm4, %v9390_v47 }
 0x1cf   : > { %7087 = vmatprep.mubr.msk.f32.mxu0 %vm1231_vm4, %v9391_v57  ;;  %7213 = vmatprep.mubr.msk.f32.mxu1 %vm1231_vm4, %v9392_v6 }
 0x1d2   : > { %7088 = vmatmul.mubr.msk.f32.gmra.mrb[50].mxu0 %vm1231_vm4, %v9393_v20  ;;  %7214 = vmatmul.mubr.msk.f32.gmra.mrb[50].mxu1 %vm1231_vm4, %v9394_v53 }
 0x1d3   : > { %7092 = vmatprep.mubr.msk.f32.mxu0 %vm1231_vm4, %v8444_v25  ;;  %7218 = vmatprep.mubr.msk.f32.mxu1 %vm1231_vm4, %v9404_v44 }
 0x1d6   : > { %7093 = vmatmul.mubr.msk.f32.vlgmr.msra.gmra.mrb[44].mxu0 %vm1231_vm4, %v9396_v58  ;;  %7219 = vmatmul.mubr.msk.f32.vlgmr.msra.gmra.mrb[44].mxu1 %vm1231_vm4, %v9405_v22 }
 0x1d7   : > { %7105 = vmatpush3.msk.msra.mxu0 %vm1248_vm1, %v8287_v41  ;;  %7231 = vmatpush3.msk.msra.mxu1 %vm1248_vm1, %v8287_v41 }
 0x1d8   : > { %7095 = vmatprep.mubr.msk.f32.mxu0 %vm1231_vm4, %v8467_v45  ;;  %7221 = vmatprep.mubr.msk.f32.mxu1 %vm1231_vm4, %v9417_v43 }
 0x1d9   : > { %7118 = vmatprep.subr.msk.mxu0 %vm1248_vm1, %v9418_v59  ;;  %7244 = vmatprep.subr.msk.mxu1 %vm1248_vm1, %v9418_v59 }
 0x1da   : > { %7096 = vmatmul.mubr.msk.f32.gmra.mrb[46].mxu0 %vm1231_vm4, %v9399_v54  ;;  %7222 = vmatmul.mubr.msk.f32.gmra.mrb[46].mxu1 %vm1231_vm4, %v9419_v2 }
 0x1db   : > { %7098 = vmatprep.mubr.msk.f32.mxu0 %vm1231_vm4, %v8486_v7  ;;  %7224 = vmatprep.mubr.msk.f32.mxu1 %vm1231_vm4, %v9409_v31 }
 0x1de   : > { %7099 = vmatmul.mubr.msk.f32.gmra.mrb[48].mxu0 %vm1231_vm4, %v9401_v40  ;;  %7225 = vmatmul.mubr.msk.f32.gmra.mrb[48].mxu1 %vm1231_vm4, %v9410_v4 }
 0x1df   : > { %7101 = vmatprep.mubr.msk.f32.mxu0 %vm1231_vm4, %v8499_v19  ;;  %7227 = vmatprep.mubr.msk.f32.mxu1 %vm1231_vm4, %v9420_v9 }
 0x1e2   : > { %7102 = vmatmul.mubr.msk.f32.gmra.mrb[50].mxu0 %vm1231_vm4, %v9403_v23  ;;  %7228 = vmatmul.mubr.msk.f32.gmra.mrb[50].mxu1 %vm1231_vm4, %v9412_v29 }
 0x1e3   : > { %7106 = vmatprep.mubr.msk.f32.mxu0 %vm1231_vm4, %v8125_v52  ;;  %7232 = vmatprep.mubr.msk.f32.mxu1 %vm1231_vm4, %v8168_v51  ;;  %v9421_v52 = vld [vmem:[#allocation33_spill] sm:$0xff] }
 0x1e6   : > { %7107 = vmatmul.mubr.msk.f32.vlgmr.msra.gmra.mrb[44].mxu0 %vm1231_vm4, %v8147_v8  ;;  %7233 = vmatmul.mubr.msk.f32.vlgmr.msra.gmra.mrb[44].mxu1 %vm1231_vm4, %v8171_v61  ;;  %v9422_v8 = vld [vmem:[#allocation30_spill] sm:$0xff] }
 0x1e7   : > { %7119 = vmatpush3.msk.msra.mxu0 %vm1248_vm1, %v9418_v59  ;;  %7245 = vmatpush3.msk.msra.mxu1 %vm1248_vm1, %v9418_v59 }
 0x1e8   : > { %7109 = vmatprep.mubr.msk.f32.mxu0 %vm1231_vm4, %v8175_v24  ;;  %7235 = vmatprep.mubr.msk.f32.mxu1 %vm1231_vm4, %v8201_v21  ;;  %v9423_v24 = vld [vmem:[#allocation31_spill] sm:$0xff] }
 0x1e9   : > { %7132 = vmatprep.subr.msk.mxu0 %vm1248_vm1, %v9421_v52  ;;  %7258 = vmatprep.subr.msk.mxu1 %vm1248_vm1, %v9421_v52 }
 0x1ea   : > { %7110 = vmatmul.mubr.msk.f32.gmra.mrb[46].mxu0 %vm1231_vm4, %v8161_v48  ;;  %7236 = vmatmul.mubr.msk.f32.gmra.mrb[46].mxu1 %vm1231_vm4, %v8221_v56  ;;  %v9424_v48 = vld [vmem:[#allocation12_spill] sm:$0xff] }
 0x1eb   : > { %7112 = vmatprep.mubr.msk.f32.mxu0 %vm1231_vm4, %v8216_v30  ;;  %7238 = vmatprep.mubr.msk.f32.mxu1 %vm1231_vm4, %v8244_v63 }
 0x1ee   : > { %7113 = vmatmul.mubr.msk.f32.gmra.mrb[48].mxu0 %vm1231_vm4, %v9422_v8  ;;  %7239 = vmatmul.mubr.msk.f32.gmra.mrb[48].mxu1 %vm1231_vm4, %v8247_v27 }
 0x1ef   : > { %7115 = vmatprep.mubr.msk.f32.mxu0 %vm1231_vm4, %v9423_v24  ;;  %7241 = vmatprep.mubr.msk.f32.mxu1 %vm1231_vm4, %v8290_v36 }
 0x1f2   : > { %7116 = vmatmul.mubr.msk.f32.gmra.mrb[50].mxu0 %vm1231_vm4, %v8241_v1  ;;  %7242 = vmatmul.mubr.msk.f32.gmra.mrb[50].mxu1 %vm1231_vm4, %v8304_v34 }
 0x1f3   : > { %7120 = vmatprep.mubr.msk.f32.mxu0 %vm1231_vm4, %v8168_v51  ;;  %7246 = vmatprep.mubr.msk.f32.mxu1 %vm1231_vm4, %v8181_v42 }
 0x1f6   : > { %7121 = vmatmul.mubr.msk.f32.vlgmr.msra.gmra.mrb[44].mxu0 %vm1231_vm4, %v8171_v61  ;;  %7247 = vmatmul.mubr.msk.f32.vlgmr.msra.gmra.mrb[44].mxu1 %vm1231_vm4, %v8189_v16 }
 0x1f7   : > { %7133 = vmatpush3.msk.msra.mxu0 %vm1248_vm1, %v9421_v52  ;;  %7259 = vmatpush3.msk.msra.mxu1 %vm1248_vm1, %v9421_v52 }
 0x1f8   : > { %7123 = vmatprep.mubr.msk.f32.mxu0 %vm1231_vm4, %v8201_v21  ;;  %7249 = vmatprep.mubr.msk.f32.mxu1 %vm1231_vm4, %v8206_v13  ;;  %v9036_v21 = vld [vmem:[%s9309_s4] ss:$0 sm:$0xff] }
 0x1f9   : > { %7146 = vmatprep.subr.msk.mxu0 %vm1248_vm1, %v9424_v48  ;;  %7272 = vmatprep.subr.msk.mxu1 %vm1248_vm1, %v9424_v48 }
 0x1fa   : > { %7124 = vmatmul.mubr.msk.f32.gmra.mrb[46].mxu0 %vm1231_vm4, %v8221_v56  ;;  %7250 = vmatmul.mubr.msk.f32.gmra.mrb[46].mxu1 %vm1231_vm4, %v8224_v18  ;;  %v9430_v56 = vld [vmem:[#allocation25_spill] sm:$0xff] }
 0x1fb   : > { %7126 = vmatprep.mubr.msk.f32.mxu0 %vm1231_vm4, %v8244_v63  ;;  %7252 = vmatprep.mubr.msk.f32.mxu1 %vm1231_vm4, %v8250_v33  ;;  %v9434_v63 = vld [vmem:[#allocation29_spill] sm:$0xff] }
 0x1fe   : > { %7127 = vmatmul.mubr.msk.f32.gmra.mrb[48].mxu0 %vm1231_vm4, %v8247_v27  ;;  %7253 = vmatmul.mubr.msk.f32.gmra.mrb[48].mxu1 %vm1231_vm4, %v8253_v3 }
 0x1ff   : > { %7129 = vmatprep.mubr.msk.f32.mxu0 %vm1231_vm4, %v8290_v36  ;;  %7255 = vmatprep.mubr.msk.f32.mxu1 %vm1231_vm4, %v8635_v49 }
 0x202   : > { %7130 = vmatmul.mubr.msk.f32.gmra.mrb[50].mxu0 %vm1231_vm4, %v8304_v34  ;;  %7256 = vmatmul.mubr.msk.f32.gmra.mrb[50].mxu1 %vm1231_vm4, %v8316_v17 }
 0x203   : > { %7134 = vmatprep.mubr.msk.f32.mxu0 %vm1231_vm4, %v8181_v42  ;;  %7260 = vmatprep.mubr.msk.f32.mxu1 %vm1231_vm4, %v8195_v60  ;;  %v9425_v42 = vld [vmem:[#allocation13_spill] sm:$0xff]  ;;  %v9426_v60 = vld [vmem:[#allocation18_spill] sm:$0xff] }
 0x206   : > { %7135 = vmatmul.mubr.msk.f32.vlgmr.msra.gmra.mrb[44].mxu0 %vm1231_vm4, %v8189_v16  ;;  %7261 = vmatmul.mubr.msk.f32.vlgmr.msra.gmra.mrb[44].mxu1 %vm1231_vm4, %v8198_v11  ;;  %v9428_v11 = vld [vmem:[#allocation24_spill] sm:$0xff] }
 0x207   : > { %7147 = vmatpush3.msk.msra.mxu0 %vm1248_vm1, %v9424_v48  ;;  %7273 = vmatpush3.msk.msra.mxu1 %vm1248_vm1, %v9424_v48 }
 0x208   : > { %7137 = vmatprep.mubr.msk.f32.mxu0 %vm1231_vm4, %v8206_v13  ;;  %7263 = vmatprep.mubr.msk.f32.mxu1 %vm1231_vm4, %v8213_v5 }
 0x209   : > { %7160 = vmatprep.subr.msk.mxu0 %vm1248_vm1, %v9425_v42  ;;  %7286 = vmatprep.subr.msk.mxu1 %vm1248_vm1, %v9425_v42 }
 0x20a   : > { %7138 = vmatmul.mubr.msk.f32.gmra.mrb[46].mxu0 %vm1231_vm4, %v8224_v18  ;;  %7264 = vmatmul.mubr.msk.f32.gmra.mrb[46].mxu1 %vm1231_vm4, %v8235_v15  ;;  %v9044_v18 = vld [vmem:[%s9310_s5] ss:$0 sm:$0xff] }
 0x20b   : > { %7140 = vmatprep.mubr.msk.f32.mxu0 %vm1231_vm4, %v8250_v33  ;;  %7266 = vmatprep.mubr.msk.f32.mxu1 %vm1231_vm4, %v8260_v39 }
 0x20e   : > { %7141 = vmatmul.mubr.msk.f32.gmra.mrb[48].mxu0 %vm1231_vm4, %v8253_v3  ;;  %7267 = vmatmul.mubr.msk.f32.gmra.mrb[48].mxu1 %vm1231_vm4, %v8263_v50  ;;  %v9051_v3 = vld [vmem:[%s9311_s6] ss:$0 sm:$0xff] }
 0x20f   : > { %7143 = vmatprep.mubr.msk.f32.mxu0 %vm1231_vm4, %v8635_v49  ;;  %7269 = vmatprep.mubr.msk.f32.mxu1 %vm1231_vm4, %v8297_v14 }
 0x212   : > { %7144 = vmatmul.mubr.msk.f32.gmra.mrb[50].mxu0 %vm1231_vm4, %v8316_v17  ;;  %7270 = vmatmul.mubr.msk.f32.gmra.mrb[50].mxu1 %vm1231_vm4, %v8307_v10 }
 0x213   : > { %7148 = vmatprep.mubr.msk.f32.mxu0 %vm1231_vm4, %v8393_v55  ;;  %7274 = vmatprep.mubr.msk.f32.mxu1 %vm1231_vm4, %v7981_v12 }
 0x216   : > { %7149 = vmatmul.mubr.msk.f32.vlgmr.msra.gmra.mrb[44].mxu0 %vm1231_vm4, %v7959_v0  ;;  %7275 = vmatmul.mubr.msk.f32.vlgmr.msra.gmra.mrb[44].mxu1 %vm1231_vm4, %v7999_v35  ;;  %v9427_v0 = vld [vmem:[#allocation15_spill] sm:$0xff] }
 0x217   : > { %7161 = vmatpush3.msk.msra.mxu0 %vm1248_vm1, %v9425_v42  ;;  %7287 = vmatpush3.msk.msra.mxu1 %vm1248_vm1, %v9425_v42 }
 0x218   : > { %7151 = vmatprep.mubr.msk.f32.mxu0 %vm1231_vm4, %v8414_v32  ;;  %7277 = vmatprep.mubr.msk.f32.mxu1 %vm1231_vm4, %v8025_v62 }
 0x219   : > { %7174 = vmatprep.subr.msk.mxu0 %vm1248_vm1, %v9426_v60  ;;  %7300 = vmatprep.subr.msk.mxu1 %vm1248_vm1, %v9426_v60 }
 0x21a   : > { %7152 = vmatmul.mubr.msk.f32.gmra.mrb[46].mxu0 %vm1231_vm4, %v8008_v38  ;;  %7278 = vmatmul.mubr.msk.f32.gmra.mrb[46].mxu1 %vm1231_vm4, %v9390_v47  ;;  %v9429_v38 = vld [vmem:[#allocation22_spill] sm:$0xff] }
 0x21b   : > { %7154 = vmatprep.mubr.msk.f32.mxu0 %vm1231_vm4, %v9391_v57  ;;  %7280 = vmatprep.mubr.msk.f32.mxu1 %vm1231_vm4, %v9392_v6 }
 0x21e   : > { %7155 = vmatmul.mubr.msk.f32.gmra.mrb[48].mxu0 %vm1231_vm4, %v9393_v20  ;;  %7281 = vmatmul.mubr.msk.f32.gmra.mrb[48].mxu1 %vm1231_vm4, %v9394_v53 }
 0x21f   : > { %7157 = vmatprep.mubr.msk.f32.mxu0 %vm1231_vm4, %v9427_v0  ;;  %7283 = vmatprep.mubr.msk.f32.mxu1 %vm1231_vm4, %v9428_v11 }
 0x222   : > { %7158 = vmatmul.mubr.msk.f32.gmra.mrb[50].mxu0 %vm1231_vm4, %v9429_v38  ;;  %7284 = vmatmul.mubr.msk.f32.gmra.mrb[50].mxu1 %vm1231_vm4, %v9430_v56 }
 0x223   : > { %7162 = vmatprep.mubr.msk.f32.mxu0 %vm1231_vm4, %v7981_v12  ;;  %7288 = vmatprep.mubr.msk.f32.mxu1 %vm1231_vm4, %v8467_v45  ;;  %v9431_v12 = vld [vmem:[#allocation26_spill] sm:$0xff] }
 0x226   : > { %7163 = vmatmul.mubr.msk.f32.vlgmr.msra.gmra.mrb[44].mxu0 %vm1231_vm4, %v7999_v35  ;;  %7289 = vmatmul.mubr.msk.f32.vlgmr.msra.gmra.mrb[44].mxu1 %vm1231_vm4, %v9399_v54  ;;  %v9432_v35 = vld [vmem:[#allocation27_spill] sm:$0xff] }
 0x227   : > { %7175 = vmatpush3.msk.msra.mxu0 %vm1248_vm1, %v9426_v60  ;;  %7301 = vmatpush3.msk.msra.mxu1 %vm1248_vm1, %v9426_v60 }
 0x228   : > { %7165 = vmatprep.mubr.msk.f32.mxu0 %vm1231_vm4, %v8025_v62  ;;  %7291 = vmatprep.mubr.msk.f32.mxu1 %vm1231_vm4, %v8486_v7  ;;  %v9433_v62 = vld [vmem:[#allocation28_spill] sm:$0xff] }
 0x22a   : > { %7166 = vmatmul.mubr.msk.f32.gmra.mrb[46].mxu0 %vm1231_vm4, %v9390_v47  ;;  %7292 = vmatmul.mubr.msk.f32.gmra.mrb[46].mxu1 %vm1231_vm4, %v9401_v40 }
 0x22b   : > { %7168 = vmatprep.mubr.msk.f32.mxu0 %vm1231_vm4, %v9392_v6  ;;  %7294 = vmatprep.mubr.msk.f32.mxu1 %vm1231_vm4, %v8499_v19 }
 0x22e   : > { %7169 = vmatmul.mubr.msk.f32.gmra.mrb[48].mxu0 %vm1231_vm4, %v9394_v53  ;;  %7295 = vmatmul.mubr.msk.f32.gmra.mrb[48].mxu1 %vm1231_vm4, %v9403_v23 }
 0x22f   : > { %7171 = vmatprep.mubr.msk.f32.mxu0 %vm1231_vm4, %v9428_v11  ;;  %7297 = vmatprep.mubr.msk.f32.mxu1 %vm1231_vm4, %v9431_v12 }
 0x232   : > { %7172 = vmatmul.mubr.msk.f32.gmra.mrb[50].mxu0 %vm1231_vm4, %v9430_v56  ;;  %7298 = vmatmul.mubr.msk.f32.gmra.mrb[50].mxu1 %vm1231_vm4, %v9432_v35 }
 0x233   : > { %7176 = vmatprep.mubr.msk.f32.mxu0 %vm1231_vm4, %v8467_v45  ;;  %7302 = vmatprep.mubr.msk.f32.mxu1 %vm1231_vm4, %v9417_v43 }
 0x236   : > { %7177 = vmatmul.mubr.msk.f32.vlgmr.msra.gmra.mrb[44].mxu0 %vm1231_vm4, %v9399_v54  ;;  %7303 = vmatmul.mubr.msk.f32.vlgmr.msra.gmra.mrb[44].mxu1 %vm1231_vm4, %v9419_v2 }
 0x237   : > { %7179 = vmatprep.mubr.msk.f32.mxu0 %vm1231_vm4, %v8486_v7  ;;  %7305 = vmatprep.mubr.msk.f32.mxu1 %vm1231_vm4, %v9409_v31 }
 0x23a   : > { %7180 = vmatmul.mubr.msk.f32.gmra.mrb[46].mxu0 %vm1231_vm4, %v9401_v40  ;;  %7306 = vmatmul.mubr.msk.f32.gmra.mrb[46].mxu1 %vm1231_vm4, %v9410_v4 }
 0x23b   : > { %7182 = vmatprep.mubr.msk.f32.mxu0 %vm1231_vm4, %v8499_v19  ;;  %7308 = vmatprep.mubr.msk.f32.mxu1 %vm1231_vm4, %v9420_v9 }
 0x23e   : > { %7183 = vmatmul.mubr.msk.f32.gmra.mrb[48].mxu0 %vm1231_vm4, %v9403_v23  ;;  %7309 = vmatmul.mubr.msk.f32.gmra.mrb[48].mxu1 %vm1231_vm4, %v9412_v29 }
 0x23f   : > { %7185 = vmatprep.mubr.msk.f32.mxu0 %vm1231_vm4, %v9431_v12  ;;  %7311 = vmatprep.mubr.msk.f32.mxu1 %vm1231_vm4, %v9433_v62 }
 0x242   : > { %7186 = vmatmul.mubr.msk.f32.gmra.mrb[50].mxu0 %vm1231_vm4, %v9432_v35  ;;  %7312 = vmatmul.mubr.msk.f32.gmra.mrb[50].mxu1 %vm1231_vm4, %v9434_v63 }
 0x279   : > { %v6926_v51 = vpop.f32.mrb[36].mxu0  ;;  %v7052_v61 = vpop.f32.mrb[36].mxu1 }
 0x27a   : > { %v2376_v16 = vadd.f32 %v6926_v51, %v9036_v21  ;;  %v3465_v13 = vadd.f32 %v7052_v61, %v9036_v21  ;;  %v2322_v5 = vpop.f32.mrb[37].mxu0  ;;  %v3417_v30 = vpop.f32.mrb[37].mxu1 }
 0x27b   : > { %v2375_v15 = vadd.f32 %v9036_v21, %v2322_v5  ;;  %v3464_v1 = vadd.f32 %v9036_v21, %v3417_v30 }
 0x27c   : > { %v2384_v27 = vmax.f32 %v2376_v16, 0.0  ;;  %v3473_v33 = vmax.f32 %v3465_v13, 0.0 }
 0x27d   : > { %v2383_v39 = vmax.f32 %v2375_v15, 0.0  ;;  %v3472_v50 = vmax.f32 %v3464_v1, 0.0  ;;  %v6929_v49 = vpop.f32.mrb[38].mxu0  ;;  %v7055_v28 = vpop.f32.mrb[38].mxu1 }
 0x27e   : > { %v2398_v41 = vmul.f32 %v9044_v18, %v2384_v27  ;;  %v3481_v36 = vmul.f32 %v9044_v18, %v3473_v33  ;;  %v2378_v14 = vadd.f32 %v6929_v49, %v9036_v21  ;;  %v3467_v34 = vadd.f32 %v7055_v28, %v9036_v21  ;;  %v2332_v10 = vpop.f32.mrb[39].mxu0  ;;  %v3427_v17 = vpop.f32.mrb[39].mxu1 }
 0x27f   : > { %v2397_v4 = vmul.f32 %v9044_v18, %v2383_v39  ;;  %v3480_v37 = vmul.f32 %v9044_v18, %v3472_v50  ;;  %v2377_v55 = vadd.f32 %v9036_v21, %v2332_v10  ;;  %v3466_v29 = vadd.f32 %v9036_v21, %v3427_v17 }
 0x280   : > { %v2412_v32 = vadd.f32 %v9051_v3, %v2398_v41  ;;  %v3489_v47 = vadd.f32 %v9051_v3, %v3481_v36  ;;  %v2386_v57 = vmax.f32 %v2378_v14, 0.0  ;;  %v3475_v6 = vmax.f32 %v3467_v34, 0.0 }
 0x281   : > { %v2411_v20 = vadd.f32 %v9051_v3, %v2397_v4  ;;  %v3488_v53 = vadd.f32 %v9051_v3, %v3480_v37  ;;  %v2385_v25 = vmax.f32 %v2377_v55, 0.0  ;;  %v3474_v58 = vmax.f32 %v3466_v29, 0.0  ;;  %v6932_v31 = vpop.f32.mrb[40].mxu0  ;;  %v7058_v45 = vpop.f32.mrb[40].mxu1 }
 0x282   : > { %2420 = vst.msk [vmem:[%s9065_s10 + $0x8] sm:$0xff] %vm1231_vm4, %v2412_v32  ;;  %6101 = vst.msk [vmem:[%s9065_s10 + $0x48] sm:$0xff] %vm1231_vm4, %v3489_v47  ;;  %v2400_v54 = vmul.f32 %v9044_v18, %v2386_v57  ;;  %v3483_v7 = vmul.f32 %v9044_v18, %v3475_v6  ;;  %v2380_v40 = vadd.f32 %v6932_v31, %v9036_v21  ;;  %v2342_v23 = vpop.f32.mrb[41].mxu0  ;;  %v3437_v44 = vpop.f32.mrb[41].mxu1 }
 0x283   : > { %v3469_v19 = vadd.f32 %v7058_v45, %v9036_v21  ;;  %2419 = vst.msk [vmem:[%s9065_s10] sm:$0xff] %vm1231_vm4, %v2411_v20  ;;  %6100 = vst.msk [vmem:[%s9065_s10 + $0x40] sm:$0xff] %vm1231_vm4, %v3488_v53  ;;  %v2399_v22 = vmul.f32 %v9044_v18, %v2385_v25  ;;  %v3482_v46 = vmul.f32 %v9044_v18, %v3474_v58 }
 0x284   : > { %v2379_v26 = vadd.f32 %v9036_v21, %v2342_v23  ;;  %v3468_v43 = vadd.f32 %v9036_v21, %v3437_v44  ;;  %v2414_v59 = vadd.f32 %v9051_v3, %v2400_v54  ;;  %v3491_v2 = vadd.f32 %v9051_v3, %v3483_v7 }
 0x285   : > { %v2388_v9 = vmax.f32 %v2380_v40, 0.0  ;;  %v3477_v52 = vmax.f32 %v3469_v19, 0.0  ;;  %v2413_v8 = vadd.f32 %v9051_v3, %v2399_v22  ;;  %v3490_v24 = vadd.f32 %v9051_v3, %v3482_v46  ;;  %v6935_v60 = vpop.f32.mrb[42].mxu0  ;;  %v7061_v0 = vpop.f32.mrb[42].mxu1 }
 0x286   : > { %v2387_v48 = vmax.f32 %v2379_v26, 0.0  ;;  %v3476_v42 = vmax.f32 %v3468_v43, 0.0  ;;  %2422 = vst.msk [vmem:[%s9065_s10 + $0x18] sm:$0xff] %vm1231_vm4, %v2414_v59  ;;  %6103 = vst.msk [vmem:[%s9065_s10 + $0x58] sm:$0xff] %vm1231_vm4, %v3491_v2  ;;  %v2382_v56 = vadd.f32 %v6935_v60, %v9036_v21  ;;  %v3471_v12 = vadd.f32 %v7061_v0, %v9036_v21  ;;  %v2352_v35 = vpop.f32.mrb[43].mxu0  ;;  %v3447_v62 = vpop.f32.mrb[43].mxu1 }
 0x287   : > { %v2402_v11 = vmul.f32 %v9044_v18, %v2388_v9  ;;  %v3485_v38 = vmul.f32 %v9044_v18, %v3477_v52  ;;  %2421 = vst.msk [vmem:[%s9065_s10 + $0x10] sm:$0xff] %vm1231_vm4, %v2413_v8  ;;  %6102 = vst.msk [vmem:[%s9065_s10 + $0x50] sm:$0xff] %vm1231_vm4, %v3490_v24  ;;  %v2381_v61 = vadd.f32 %v9036_v21, %v2352_v35 }
 0x288   : > { %v2401_v63 = vmul.f32 %v9044_v18, %v2387_v48  ;;  %v3484_v51 = vmul.f32 %v9044_v18, %v3476_v42  ;;  %v3470_v16 = vadd.f32 %v9036_v21, %v3447_v62  ;;  %v2390_v30 = vmax.f32 %v2382_v56, 0.0 }
 0x289   : > { %v2416_v13 = vadd.f32 %v9051_v3, %v2402_v11  ;;  %v3493_v5 = vadd.f32 %v9051_v3, %v3485_v38  ;;  %v3479_v15 = vmax.f32 %v3471_v12, 0.0  ;;  %v2389_v33 = vmax.f32 %v2381_v61, 0.0 }
 0x28a   : > { %v2415_v1 = vadd.f32 %v9051_v3, %v2401_v63  ;;  %v3492_v27 = vadd.f32 %v9051_v3, %v3484_v51  ;;  %v3478_v39 = vmax.f32 %v3470_v16, 0.0  ;;  %v2404_v50 = vmul.f32 %v9044_v18, %v2390_v30 }
 0x28b   : > { %2424 = vst.msk [vmem:[%s9065_s10 + $0x28] sm:$0xff] %vm1231_vm4, %v2416_v13  ;;  %6105 = vst.msk [vmem:[%s9065_s10 + $0x68] sm:$0xff] %vm1231_vm4, %v3493_v5  ;;  %v3487_v49 = vmul.f32 %v9044_v18, %v3479_v15  ;;  %v2403_v28 = vmul.f32 %v9044_v18, %v2389_v33 }
 0x28c   : > { %2423 = vst.msk [vmem:[%s9065_s10 + $0x20] sm:$0xff] %vm1231_vm4, %v2415_v1  ;;  %6104 = vst.msk [vmem:[%s9065_s10 + $0x60] sm:$0xff] %vm1231_vm4, %v3492_v27  ;;  %v3486_v41 = vmul.f32 %v9044_v18, %v3478_v39  ;;  %v2418_v36 = vadd.f32 %v9051_v3, %v2404_v50 }
 0x28d   : > { %v3495_v14 = vadd.f32 %v9051_v3, %v3487_v49  ;;  %v2417_v34 = vadd.f32 %v9051_v3, %v2403_v28 }
 0x28e   : > { %v3494_v10 = vadd.f32 %v9051_v3, %v3486_v41  ;;  %2426 = vst.msk [vmem:[%s9065_s10 + $0x38] sm:$0xff] %vm1231_vm4, %v2418_v36 }
 0x28f   : > { %6107 = vst.msk [vmem:[%s9065_s10 + $0x78] sm:$0xff] %vm1231_vm4, %v3495_v14  ;;  %2425 = vst.msk [vmem:[%s9065_s10 + $0x30] sm:$0xff] %vm1231_vm4, %v2417_v34 }
 0x290   : > { %6106 = vst.msk [vmem:[%s9065_s10 + $0x70] sm:$0xff] %vm1231_vm4, %v3494_v10 }
 0x309   : > { %v7178_v17 = vpop.f32.mrb[44].mxu0  ;;  %v7304_v4 = vpop.f32.mrb[44].mxu1 }
 0x30a   : > { %v4519_v37 = vadd.f32 %v7178_v17, %v9036_v21  ;;  %v5565_v55 = vadd.f32 %v7304_v4, %v9036_v21  ;;  %v4471_v29 = vpop.f32.mrb[45].mxu0  ;;  %v5517_v32 = vpop.f32.mrb[45].mxu1 }
 0x30b   : > { %v4518_v47 = vadd.f32 %v9036_v21, %v4471_v29  ;;  %v5564_v57 = vadd.f32 %v9036_v21, %v5517_v32 }
 0x30c   : > { %v4527_v6 = vmax.f32 %v4519_v37, 0.0  ;;  %v5573_v20 = vmax.f32 %v5565_v55, 0.0 }
 0x30d   : > { %v4526_v53 = vmax.f32 %v4518_v47, 0.0  ;;  %v5572_v25 = vmax.f32 %v5564_v57, 0.0  ;;  %v7181_v58 = vpop.f32.mrb[46].mxu0  ;;  %v7307_v31 = vpop.f32.mrb[46].mxu1 }
 0x30e   : > { %v4535_v45 = vmul.f32 %v9044_v18, %v4527_v6  ;;  %v5581_v54 = vmul.f32 %v9044_v18, %v5573_v20  ;;  %v4521_v7 = vadd.f32 %v7181_v58, %v9036_v21  ;;  %v5567_v40 = vadd.f32 %v7307_v31, %v9036_v21  ;;  %v4481_v19 = vpop.f32.mrb[47].mxu0  ;;  %v5527_v23 = vpop.f32.mrb[47].mxu1 }
 0x30f   : > { %v4534_v44 = vmul.f32 %v9044_v18, %v4526_v53  ;;  %v5580_v22 = vmul.f32 %v9044_v18, %v5572_v25  ;;  %v4520_v46 = vadd.f32 %v9036_v21, %v4481_v19  ;;  %v5566_v26 = vadd.f32 %v9036_v21, %v5527_v23  ;;  %v5711_v19 = vld [vmem:[%s9065_s10 + $0x10] sm:$0xff] (%p7769_p5)  ;;  %v5713_v23 = vld [vmem:[%s9065_s10 + $0x18] sm:$0xff] (%p7769_p5) }
 0x310   : > { %v4543_v43 = vadd.f32 %v9051_v3, %v4535_v45  ;;  %v5589_v59 = vadd.f32 %v9051_v3, %v5581_v54  ;;  %v4529_v2 = vmax.f32 %v4521_v7, 0.0  ;;  %v5575_v9 = vmax.f32 %v5567_v40, 0.0  ;;  %5712 = vst [vmem:[%s9227_s18 + $0x10] sm:$0xff] (%p7769_p5), %v5711_v19  ;;  %5714 = vst [vmem:[%s9227_s18 + $0x18] sm:$0xff] (%p7769_p5), %v5713_v23 }
 0x311   : > { %v4542_v52 = vadd.f32 %v9051_v3, %v4534_v44  ;;  %v5588_v8 = vadd.f32 %v9051_v3, %v5580_v22  ;;  %v4528_v24 = vmax.f32 %v4520_v46, 0.0  ;;  %v5574_v48 = vmax.f32 %v5566_v26, 0.0  ;;  %v7184_v42 = vpop.f32.mrb[48].mxu0  ;;  %v7310_v60 = vpop.f32.mrb[48].mxu1  ;;  %v5715_v44 = vld [vmem:[%s9065_s10 + $0x20] sm:$0xff] (%p7769_p5)  ;;  %v5717_v22 = vld [vmem:[%s9065_s10 + $0x28] sm:$0xff] (%p7769_p5) }
 0x312   : > { %6190 = vst.msk [vmem:[%s9065_s10 + $0x88] sm:$0xff] %vm1231_vm4, %v4543_v43  ;;  %6279 = vst.msk [vmem:[%s9065_s10 + $0xc8] sm:$0xff] %vm1231_vm4, %v5589_v59  ;;  %v4537_v0 = vmul.f32 %v9044_v18, %v4529_v2  ;;  %v5583_v11 = vmul.f32 %v9044_v18, %v5575_v9  ;;  %v4523_v38 = vadd.f32 %v7184_v42, %v9036_v21  ;;  %v4491_v12 = vpop.f32.mrb[49].mxu0  ;;  %v5537_v35 = vpop.f32.mrb[49].mxu1  ;;  %v5719_v46 = vld [vmem:[%s9065_s10 + $0x30] sm:$0xff] (%p7769_p5)  ;;  %v5721_v26 = vld [vmem:[%s9065_s10 + $0x38] sm:$0xff] (%p7769_p5) }
 0x313   : > { %v5569_v56 = vadd.f32 %v7310_v60, %v9036_v21  ;;  %6189 = vst.msk [vmem:[%s9065_s10 + $0x80] sm:$0xff] %vm1231_vm4, %v4542_v52  ;;  %6278 = vst.msk [vmem:[%s9065_s10 + $0xc0] sm:$0xff] %vm1231_vm4, %v5588_v8  ;;  %v4536_v62 = vmul.f32 %v9044_v18, %v4528_v24  ;;  %v5582_v63 = vmul.f32 %v9044_v18, %v5574_v48  ;;  %v5723_v43 = vld [vmem:[%s9065_s10 + $0x40] sm:$0xff] (%p7769_p5)  ;;  %v5725_v59 = vld [vmem:[%s9065_s10 + $0x48] sm:$0xff] (%p7769_p5) }
 0x314   : > { %v4522_v51 = vadd.f32 %v9036_v21, %v4491_v12  ;;  %v5568_v61 = vadd.f32 %v9036_v21, %v5537_v35  ;;  %v4545_v16 = vadd.f32 %v9051_v3, %v4537_v0  ;;  %v5591_v13 = vadd.f32 %v9051_v3, %v5583_v11  ;;  %v5727_v2 = vld [vmem:[%s9065_s10 + $0x50] sm:$0xff] (%p7769_p5)  ;;  %v5729_v9 = vld [vmem:[%s9065_s10 + $0x58] sm:$0xff] (%p7769_p5)  ;;  %5716 = vst [vmem:[%s9227_s18 + $0x20] sm:$0xff] (%p7769_p5), %v5715_v44  ;;  %v5731_v52 = vld [vmem:[%s9065_s10 + $0x60] sm:$0xff] (%p7769_p5) }
 0x315   : > { %v4531_v5 = vmax.f32 %v4523_v38, 0.0  ;;  %v5577_v30 = vmax.f32 %v5569_v56, 0.0  ;;  %v4544_v15 = vadd.f32 %v9051_v3, %v4536_v62  ;;  %v5590_v1 = vadd.f32 %v9051_v3, %v5582_v63  ;;  %v7187_v39 = vpop.f32.mrb[50].mxu0  ;;  %v7313_v50 = vpop.f32.mrb[50].mxu1  ;;  %5718 = vst [vmem:[%s9227_s18 + $0x28] sm:$0xff] (%p7769_p5), %v5717_v22  ;;  %5720 = vst [vmem:[%s9227_s18 + $0x30] sm:$0xff] (%p7769_p5), %v5719_v46 }
 0x316   : > { %v4530_v27 = vmax.f32 %v4522_v51, 0.0  ;;  %v5576_v33 = vmax.f32 %v5568_v61, 0.0  ;;  %6192 = vst.msk [vmem:[%s9065_s10 + $0x98] sm:$0xff] %vm1231_vm4, %v4545_v16  ;;  %6281 = vst.msk [vmem:[%s9065_s10 + $0xd8] sm:$0xff] %vm1231_vm4, %v5591_v13  ;;  %v4525_v41 = vadd.f32 %v7187_v39, %v9036_v21  ;;  %v5571_v36 = vadd.f32 %v7313_v50, %v9036_v21  ;;  %v4501_v14 = vpop.f32.mrb[51].mxu0  ;;  %v5547_v34 = vpop.f32.mrb[51].mxu1 }
 0x317   : > { %v4539_v49 = vmul.f32 %v9044_v18, %v4531_v5  ;;  %v5585_v28 = vmul.f32 %v9044_v18, %v5577_v30  ;;  %6191 = vst.msk [vmem:[%s9065_s10 + $0x90] sm:$0xff] %vm1231_vm4, %v4544_v15  ;;  %6280 = vst.msk [vmem:[%s9065_s10 + $0xd0] sm:$0xff] %vm1231_vm4, %v5590_v1  ;;  %v4524_v4 = vadd.f32 %v9036_v21, %v4501_v14  ;;  %v5733_v8 = vld [vmem:[%s9065_s10 + $0x68] sm:$0xff] (%p7769_p5)  ;;  %v5735_v24 = vld [vmem:[%s9065_s10 + $0x70] sm:$0xff] (%p7769_p5) }
 0x318   : > { %v4538_v10 = vmul.f32 %v9044_v18, %v4530_v27  ;;  %v5584_v17 = vmul.f32 %v9044_v18, %v5576_v33  ;;  %v5570_v37 = vadd.f32 %v9036_v21, %v5547_v34  ;;  %v4533_v32 = vmax.f32 %v4525_v41, 0.0  ;;  %5722 = vst [vmem:[%s9227_s18 + $0x38] sm:$0xff] (%p7769_p5), %v5721_v26  ;;  %5724 = vst [vmem:[%s9227_s18 + $0x100] sm:$0xff] (%p7769_p5), %v5723_v43  ;;  %v5737_v48 = vld [vmem:[%s9065_s10 + $0x78] sm:$0xff] (%p7769_p5) }
 0x319   : > { %v4547_v55 = vadd.f32 %v9051_v3, %v4539_v49  ;;  %v5593_v29 = vadd.f32 %v9051_v3, %v5585_v28  ;;  %v5579_v47 = vmax.f32 %v5571_v36, 0.0  ;;  %v4532_v20 = vmax.f32 %v4524_v4, 0.0  ;;  %5726 = vst [vmem:[%s9227_s18 + $0x108] sm:$0xff] (%p7769_p5), %v5725_v59  ;;  %5728 = vst [vmem:[%s9227_s18 + $0x110] sm:$0xff] (%p7769_p5), %v5727_v2  ;;  %v5741_v60 = vld [vmem:[%s9065_s10 + $0x88] sm:$0xff] (%p7769_p5) }
 0x31a   : > { %v4546_v57 = vadd.f32 %v9051_v3, %v4538_v10  ;;  %v5592_v6 = vadd.f32 %v9051_v3, %v5584_v17  ;;  %v5578_v53 = vmax.f32 %v5570_v37, 0.0  ;;  %v4541_v21 = vmul.f32 %v9044_v18, %v4533_v32  ;;  %5611 = sbr.rel (!%p7769_p5) target bundleno = 810 (0x32a), region = 52  ;;  %5730 = vst [vmem:[%s9227_s18 + $0x118] sm:$0xff] (%p7769_p5), %v5729_v9  ;;  %5732 = vst [vmem:[%s9227_s18 + $0x120] sm:$0xff] (%p7769_p5), %v5731_v52  ;;  %v5739_v42 = vld [vmem:[%s9065_s10 + $0x80] sm:$0xff] (%p7769_p5)  ;;  %v5757_v63 = vld [vmem:[%s9065_s10 + $0xc8] sm:$0xff] (%p7769_p5) }
 0x31b   : > { %6194 = vst.msk [vmem:[%s9065_s10 + $0xa8] sm:$0xff] %vm1231_vm4, %v4547_v55  ;;  %6283 = vst.msk [vmem:[%s9065_s10 + $0xe8] sm:$0xff] %vm1231_vm4, %v5593_v29  ;;  %v5587_v25 = vmul.f32 %v9044_v18, %v5579_v47  ;;  %v4540_v58 = vmul.f32 %v9044_v18, %v4532_v20  ;;  %v5755_v62 = vld [vmem:[%s9065_s10 + $0xc0] sm:$0xff] (%p7769_p5) }
 0x31c   : > { %6193 = vst.msk [vmem:[%s9065_s10 + $0xa0] sm:$0xff] %vm1231_vm4, %v4546_v57  ;;  %6282 = vst.msk [vmem:[%s9065_s10 + $0xe0] sm:$0xff] %vm1231_vm4, %v5592_v6  ;;  %v5586_v31 = vmul.f32 %v9044_v18, %v5578_v53  ;;  %v4549_v45 = vadd.f32 %v9051_v3, %v4541_v21  ;;  %v5707_v18 = vld [vmem:[%s9065_s10] sm:$0xff] (%p7769_p5) }
 0x31d   : > { %v5595_v54 = vadd.f32 %v9051_v3, %v5587_v25  ;;  %v4548_v7 = vadd.f32 %v9051_v3, %v4540_v58  ;;  %5708 = vst [vmem:[%s9227_s18] sm:$0xff] (%p7769_p5), %v5707_v18  ;;  %5734 = vst [vmem:[%s9227_s18 + $0x128] sm:$0xff] (%p7769_p5), %v5733_v8  ;;  %v5745_v11 = vld [vmem:[%s9065_s10 + $0x98] sm:$0xff] (%p7769_p5) }
 0x31e   : > { %v5594_v40 = vadd.f32 %v9051_v3, %v5586_v31  ;;  %6196 = vst.msk [vmem:[%s9065_s10 + $0xb8] sm:$0xff] %vm1231_vm4, %v4549_v45  ;;  %v5709_v3 = vld [vmem:[%s9065_s10 + $0x8] sm:$0xff] (%p7769_p5)  ;;  %5736 = vst [vmem:[%s9227_s18 + $0x130] sm:$0xff] (%p7769_p5), %v5735_v24  ;;  %v5743_v0 = vld [vmem:[%s9065_s10 + $0x90] sm:$0xff] (%p7769_p5) }
 0x31f   : > { %6285 = vst.msk [vmem:[%s9065_s10 + $0xf8] sm:$0xff] %vm1231_vm4, %v5595_v54  ;;  %6195 = vst.msk [vmem:[%s9065_s10 + $0xb0] sm:$0xff] %vm1231_vm4, %v4548_v7  ;;  %v5759_v51 = vld [vmem:[%s9065_s10 + $0xd0] sm:$0xff] (%p7769_p5)  ;;  %v5761_v61 = vld [vmem:[%s9065_s10 + $0xd8] sm:$0xff] (%p7769_p5) }
 0x320   : > { %6284 = vst.msk [vmem:[%s9065_s10 + $0xf0] sm:$0xff] %vm1231_vm4, %v5594_v40  ;;  %5710 = vst [vmem:[%s9227_s18 + $0x8] sm:$0xff] (%p7769_p5), %v5709_v3 }
 0x321   : > { %5738 = vst [vmem:[%s9227_s18 + $0x138] sm:$0xff] %v5737_v48  ;;  %5740 = vst [vmem:[%s9227_s18 + $0x200] sm:$0xff] %v5739_v42 }
 0x322   : > { %5742 = vst [vmem:[%s9227_s18 + $0x208] sm:$0xff] %v5741_v60  ;;  %5744 = vst [vmem:[%s9227_s18 + $0x210] sm:$0xff] %v5743_v0  ;;  %v5749_v56 = vld [vmem:[%s9065_s10 + $0xa8] sm:$0xff] }
 0x323   : > { %v5747_v38 = vld [vmem:[%s9065_s10 + $0xa0] sm:$0xff]  ;;  %5746 = vst [vmem:[%s9227_s18 + $0x218] sm:$0xff] %v5745_v11  ;;  %5750 = vst [vmem:[%s9227_s18 + $0x228] sm:$0xff] %v5749_v56  ;;  %v5765_v13 = vld [vmem:[%s9065_s10 + $0xe8] sm:$0xff] }
 0x324   : > { %5748 = vst [vmem:[%s9227_s18 + $0x220] sm:$0xff] %v5747_v38  ;;  %5756 = vst [vmem:[%s9227_s18 + $0x300] sm:$0xff] %v5755_v62  ;;  %v5763_v16 = vld [vmem:[%s9065_s10 + $0xe0] sm:$0xff] }
 0x325   : > { %v5753_v35 = vld [vmem:[%s9065_s10 + $0xb8] sm:$0xff]  ;;  %5758 = vst [vmem:[%s9227_s18 + $0x308] sm:$0xff] %v5757_v63  ;;  %5760 = vst [vmem:[%s9227_s18 + $0x310] sm:$0xff] %v5759_v51 }
 0x326   : > { %v5751_v12 = vld [vmem:[%s9065_s10 + $0xb0] sm:$0xff]  ;;  %5754 = vst [vmem:[%s9227_s18 + $0x238] sm:$0xff] %v5753_v35  ;;  %5762 = vst [vmem:[%s9227_s18 + $0x318] sm:$0xff] %v5761_v61  ;;  %v5769_v30 = vld [vmem:[%s9065_s10 + $0xf8] sm:$0xff] }
 0x327   : > { %5752 = vst [vmem:[%s9227_s18 + $0x230] sm:$0xff] %v5751_v12  ;;  %5764 = vst [vmem:[%s9227_s18 + $0x320] sm:$0xff] %v5763_v16  ;;  %v5767_v5 = vld [vmem:[%s9065_s10 + $0xf0] sm:$0xff] }
 0x328   : > { %5766 = vst [vmem:[%s9227_s18 + $0x328] sm:$0xff] %v5765_v13  ;;  %5768 = vst [vmem:[%s9227_s18 + $0x330] sm:$0xff] %v5767_v5 }
 0x329   : > { %5770 = vst [vmem:[%s9227_s18 + $0x338] sm:$0xff] %v5769_v30 }
 0x32a PF: > { %s17_s30 = sadd.s32 1, %s7681_s30   ;;  %s9435_s24 = smov %s7661_s25 }
 0x32b   : > { %p14_p10 = scmp.ge.s32.totalorder %s17_s30, 10   ;;  %s9436_s25 = smov %s7780_s16 }
 0x32c   : > { %s9437_s26 = smov %s7673_s28  ;;  %s9438_s27 = smov %s7677_s29 }
 0x32d   : > { %s9439_s28 = smov %s9442_s8  ;;  %s9440_s29 = smov %s9446_s9 }
 0x32e   :  { %16 = sbr.rel (!%p14_p10) target bundleno = 4 (0x4), region = 132 }

</bundles_post_ra>
